<compile_context>
chip_gen: v7x
topology: tpu7x:2x2x1
jax: 0.10.0
libtpu: 0.0.40
codegen_flags: <defaults>
</compile_context>

<pallas_src>
import functools

import jax
import jax.numpy as jnp
import numpy as np
from jax import lax
from jax.experimental import pallas as pl
from jax.experimental.pallas import tpu as pltpu


# --------------------------------------------------------------------------
# Pallas kernels
# --------------------------------------------------------------------------
def _fused_conv_kernel(zc_ref, xc_ref, wt_ref, bt_ref, ws_ref, bs_ref,
                       t_ref, s_ref):
    # zc_ref: (Kz, Lz)  im2col'ed template input (one batch element), K=(c,i,j)
    # xc_ref: (Kx, Lx)  im2col'ed search   input (one batch element)
    # wt_ref: (Ot, Kz)  fused template conv weights  (cls | loc), OIHW reshape
    # bt_ref: (Ot, 1)
    # ws_ref: (Os, Kx)  fused search conv weights    (cls | loc)
    # bs_ref: (Os, 1)
    # t_ref : (Ot, Lz)  template features (spatial on lanes)
    # s_ref : (Os, Lx)  search features   (spatial on lanes)
    t = jnp.dot(wt_ref[...], zc_ref[...], preferred_element_type=jnp.float32)
    t_ref[...] = (t + bt_ref[...]).astype(t_ref.dtype)
    s = jnp.dot(ws_ref[...], xc_ref[...], preferred_element_type=jnp.float32)
    s_ref[...] = (s + bs_ref[...]).astype(s_ref.dtype)


def _fused_xcorr_kernel(kc_ref, kl_ref, f_ref, aw_ref, ab_ref,
                        cls_ref, loc_ref):
    # kc_ref: (n_cls, K)    per-batch cls template kernel matrix, K=(c,tap)
    # kl_ref: (n_loc, K)    per-batch loc template kernel matrix
    # f_ref : (2K, L)       combined im2col'ed cls|loc search feature (L lanes)
    # aw_ref: (n_loc, n_loc)  1x1 loc_adjust weights
    # ab_ref: (n_loc, 1)      1x1 loc_adjust bias
    # cls_ref: (n_cls, L), loc_ref: (n_loc, L)  lane-dense outputs (NCHW-ready)
    K = kc_ref.shape[1]
    fc = f_ref[0:K, :]          # sublane-aligned static slices (K % 8 == 0)
    fl = f_ref[K:, :]

    cls_ref[...] = jnp.dot(kc_ref[...], fc,
                           preferred_element_type=jnp.float32).astype(cls_ref.dtype)

    xl = jnp.dot(kl_ref[...], fl, preferred_element_type=jnp.float32)
    # fused 1x1 loc_adjust as an unrolled VPU broadcast-FMA (no tiny MXU dot)
    aw = aw_ref[...]
    adj = ab_ref[...]                                   # (n_loc, 1) broadcasts
    for p in range(aw_ref.shape[0]):                    # unrolled, n_loc = 4
        adj = adj + aw[:, p:p + 1] * xl[p:p + 1, :]
    loc_ref[...] = adj.astype(loc_ref.dtype)


# --------------------------------------------------------------------------
# pallas_call wrappers
# --------------------------------------------------------------------------
_PARALLEL = pltpu.CompilerParams(dimension_semantics=("parallel",))


def fused_convs(zcol, xcol, wt, bt, ws, bs):
    B, Kz, Lz = zcol.shape
    _, Kx, Lx = xcol.shape
    Ot = wt.shape[0]
    Os = ws.shape[0]
    return pl.pallas_call(
        _fused_conv_kernel,
        out_shape=(jax.ShapeDtypeStruct((B, Ot, Lz), jnp.float32),
                   jax.ShapeDtypeStruct((B, Os, Lx), jnp.float32)),
        grid=(B,),
        in_specs=[
            pl.BlockSpec((None, Kz, Lz), lambda b: (b, 0, 0)),
            pl.BlockSpec((None, Kx, Lx), lambda b: (b, 0, 0)),
            pl.BlockSpec((Ot, Kz), lambda b: (0, 0)),
            pl.BlockSpec((Ot, 1), lambda b: (0, 0)),
            pl.BlockSpec((Os, Kx), lambda b: (0, 0)),
            pl.BlockSpec((Os, 1), lambda b: (0, 0)),
        ],
        out_specs=(pl.BlockSpec((None, Ot, Lz), lambda b: (b, 0, 0)),
                   pl.BlockSpec((None, Os, Lx), lambda b: (b, 0, 0))),
        compiler_params=_PARALLEL,
    )(zcol, xcol, wt, bt, ws, bs)


def fused_xcorr(kcls, kloc, fall, aw, ab):
    B, n_cls, K = kcls.shape
    n_loc = kloc.shape[1]
    L = fall.shape[2]
    return pl.pallas_call(
        _fused_xcorr_kernel,
        out_shape=(jax.ShapeDtypeStruct((B, n_cls, L), jnp.float32),
                   jax.ShapeDtypeStruct((B, n_loc, L), jnp.float32)),
        grid=(B,),
        in_specs=[
            pl.BlockSpec((None, n_cls, K), lambda b: (b, 0, 0)),
            pl.BlockSpec((None, n_loc, K), lambda b: (b, 0, 0)),
            pl.BlockSpec((None, 2 * K, L), lambda b: (b, 0, 0)),
            pl.BlockSpec((n_loc, n_loc), lambda b: (0, 0)),
            pl.BlockSpec((n_loc, 1), lambda b: (0, 0)),
        ],
        out_specs=(pl.BlockSpec((None, n_cls, L), lambda b: (b, 0, 0)),
                   pl.BlockSpec((None, n_loc, L), lambda b: (b, 0, 0))),
        compiler_params=_PARALLEL,
    )(kcls, kloc, fall, aw, ab)


# --------------------------------------------------------------------------
# XLA glue (im2col / weight packing), all in NCHW, channel-major K ordering
# --------------------------------------------------------------------------
def _im2col_cmajor(x, kh, kw):
    """(B,C,H,W) -> (B, C*kh*kw, Ho*Wo); row order (c, tap_i, tap_j),
    column = out_row*Wo + out_col (spatial axis sits on lanes).
    Matches a plain OIHW weight reshape (O, I*kh*kw) on the other matmul side.
    """
    # TODO(synk): the window extraction stays as XLA slices; an in-kernel
    # version would need lane-crossing gathers/reshapes of 6x6-in-14 windows.
    B, C, H, W = x.shape
    Ho, Wo = H - kh + 1, W - kw + 1
    taps = [x[:, :, i:i + Ho, j:j + Wo].reshape(B, C, Ho * Wo)
            for i in range(kh) for j in range(kw)]
    col = jnp.stack(taps, axis=2)                  # (B, C, kh*kw, Ho*Wo)
    return col.reshape(B, C * kh * kw, Ho * Wo), (Ho, Wo)


# --------------------------------------------------------------------------
# UPChannelBAN forward
# --------------------------------------------------------------------------
def upchannel_ban_forward(z_nchw, x_nchw, params, cls_out_channels=2):
    """Pallas implementation of UPChannelBAN.forward.  I/O layout: NCHW."""
    f32 = jnp.float32
    z = z_nchw.astype(f32)
    x = x_nchw.astype(f32)
    B, C, Hz, Wz = z.shape
    _, _, Hx, Wx = x.shape
    n_cls, n_loc = cls_out_channels, 4

    # ---- fused weight matrices: pure reshapes of OIHW (no transposes) ----
    wt = jnp.concatenate([params["tc_w"], params["tl_w"]], 0).reshape(
        C * (n_cls + n_loc), C * 9).astype(f32)
    bt = jnp.concatenate([params["tc_b"], params["tl_b"]]).reshape(-1, 1).astype(f32)
    ws = jnp.concatenate([params["sc_w"], params["sl_w"]], 0).reshape(
        2 * C, C * 9).astype(f32)
    bs = jnp.concatenate([params["sc_b"], params["sl_b"]]).reshape(-1, 1).astype(f32)

    # ---- im2col of the raw inputs (3x3 taps, channel-major rows) ----
    zcol, (hzo, wzo) = _im2col_cmajor(z, 3, 3)     # (B, 9C, (Hz-2)(Wz-2))
    xcol, (hxo, wxo) = _im2col_cmajor(x, 3, 3)     # (B, 9C, (Hx-2)(Wx-2))

    # ---- call 1: all four 3x3 convs in one kernel ----
    t_out, s_out = fused_convs(zcol, xcol, wt, bt, ws, bs)
    # t_out: (B, C*(n_cls+n_loc), hzo*wzo)   s_out: (B, 2C, hxo*wxo)

    # ---- template-side per-batch kernel matrices: pure reshapes ----
    t_sp = hzo * wzo
    kcls = t_out[:, :C * n_cls, :].reshape(B, n_cls, C * t_sp)
    kloc = t_out[:, C * n_cls:, :].reshape(B, n_loc, C * t_sp)

    # ---- search-side im2col for the xcorr (one combined cls|loc slab) ----
    feat = s_out.reshape(B, 2 * C, hxo, wxo)
    fall, (Ho, Wo) = _im2col_cmajor(feat, hzo, wzo)      # (B, 2*C*t_sp, Ho*Wo)

    aw = params["adj_w"][:, :, 0, 0].astype(f32)         # (4, 4)
    ab = params["adj_b"].reshape(n_loc, 1).astype(f32)   # (4, 1)

    # ---- call 2: both xcorrs + fused 1x1 loc_adjust, lane-dense outputs ----
    cls, loc = fused_xcorr(kcls, kloc, fall, aw, ab)

    # outputs are already (B, channel, spatial) -> just unflatten spatial (NCHW)
    return cls.reshape(B, n_cls, Ho, Wo), loc.reshape(B, n_loc, Ho, Wo)


# --------------------------------------------------------------------------
# Pure-JAX reference (mirrors the PyTorch module exactly) for sanity check
# --------------------------------------------------------------------------
def _conv2d_nchw(x, w, b=None, groups=1):
    out = lax.conv_general_dilated(
        x, w, window_strides=(1, 1), padding="VALID",
        dimension_numbers=("NCHW", "OIHW", "NCHW"),
        feature_group_count=groups, precision=lax.Precision.HIGHEST)
    if b is not None:
        out = out + b[None, :, None, None]
    return out


def _xcorr_fast_ref(x, kernel):
    B = kernel.shape[0]
    pk = kernel.reshape(-1, x.shape[1], kernel.shape[2], kernel.shape[3])
    px = x.reshape(1, -1, x.shape[2], x.shape[3])
    po = _conv2d_nchw(px, pk, groups=B)
    return po.reshape(B, -1, po.shape[2], po.shape[3])


def reference_forward(z, x, params):
    cls_kernel = _conv2d_nchw(z, params["tc_w"], params["tc_b"])
    loc_kernel = _conv2d_nchw(z, params["tl_w"], params["tl_b"])
    cls_feature = _conv2d_nchw(x, params["sc_w"], params["sc_b"])
    loc_feature = _conv2d_nchw(x, params["sl_w"], params["sl_b"])
    cls = _xcorr_fast_ref(cls_feature, cls_kernel)
    loc = _conv2d_nchw(_xcorr_fast_ref(loc_feature, loc_kernel),
                       params["adj_w"], params["adj_b"])
    return cls, loc


# --------------------------------------------------------------------------
# Deterministic parameter init (PyTorch Conv2d default: U(-k, k), k=1/sqrt(fan_in))
# --------------------------------------------------------------------------
def init_params(key, feature_in=16, cls_out=2):
    def conv_init(key, o, i, kh, kw):
        k1, k2 = jax.random.split(key)
        bound = 1.0 / np.sqrt(i * kh * kw)
        w = jax.random.uniform(k1, (o, i, kh, kw), jnp.float32, -bound, bound)
        b = jax.random.uniform(k2, (o,), jnp.float32, -bound, bound)
        return w, b

    keys = jax.random.split(key, 5)
    p = {}
    p["tc_w"], p["tc_b"] = conv_init(keys[0], feature_in * cls_out, feature_in, 3, 3)
    p["tl_w"], p["tl_b"] = conv_init(keys[1], feature_in * 4, feature_in, 3, 3)
    p["sc_w"], p["sc_b"] = conv_init(keys[2], feature_in, feature_in, 3, 3)
    p["sl_w"], p["sl_b"] = conv_init(keys[3], feature_in, feature_in, 3, 3)
    p["adj_w"], p["adj_b"] = conv_init(keys[4], 4, 4, 1, 1)
    return p


# --------------------------------------------------------------------------
if __name__ == "__main__":
    FEATURE_IN = 16
    CLS_OUT = 2
    B = 2
    HZ = WZ = 8     # template spatial
    HX = WX = 16    # search spatial

    key = jax.random.PRNGKey(0)
    kz, kx, kp = jax.random.split(key, 3)
    z_f = jax.random.normal(kz, (B, FEATURE_IN, HZ, WZ), jnp.float32)
    x_f = jax.random.normal(kx, (B, FEATURE_IN, HX, WX), jnp.float32)
    params = init_params(kp, FEATURE_IN, CLS_OUT)

    fwd = jax.jit(functools.partial(upchannel_ban_forward, cls_out_channels=CLS_OUT))
    cls_out, loc_out = fwd(z_f, x_f, params)
    jax.block_until_ready((cls_out, loc_out))

    # sanity check against a pure-JAX transcription of the PyTorch module
    cls_ref, loc_ref = reference_forward(z_f, x_f, params)
    np.testing.assert_allclose(np.asarray(cls_out), np.asarray(cls_ref),
                               rtol=2e-2, atol=2e-2)
    np.testing.assert_allclose(np.asarray(loc_out), np.asarray(loc_ref),
                               rtol=2e-2, atol=2e-2)
    assert cls_out.shape == (B, CLS_OUT, HX - HZ + 1, WX - WZ + 1)
    assert loc_out.shape == (B, 4, HX - HZ + 1, WX - WZ + 1)

    print("KERNEL_OK")
</pallas_src>

<mosaic_0001>
module attributes {stable_mosaic.version = 11 : i64} {
  func.func @_fused_conv_kernel(%arg0: i32, %arg1: memref<1x144x36xf32, #tpu.memory_space<vmem>>, %arg2: memref<1x144x196xf32, #tpu.memory_space<vmem>>, %arg3: memref<96x144xf32, #tpu.memory_space<vmem>>, %arg4: memref<96x1xf32, #tpu.memory_space<vmem>>, %arg5: memref<32x144xf32, #tpu.memory_space<vmem>>, %arg6: memref<32x1xf32, #tpu.memory_space<vmem>>, %arg7: memref<1x96x36xf32, #tpu.memory_space<vmem>>, %arg8: memref<1x32x196xf32, #tpu.memory_space<vmem>>) attributes {dimension_semantics = [#tpu.dimension_semantics<parallel>], iteration_bounds = array<i64: 2>, scalar_prefetch = 0 : i64, scratch_operands = 0 : i64, tpu.core_type = #tpu.core_type<tc>, window_params = [{transform_indices = @transform_0, window_bounds = array<i64: 1, 144, 36>}, {transform_indices = @transform_1, window_bounds = array<i64: 1, 144, 196>}, {pipeline_mode = #tpu.pipeline_mode<synchronous>, transform_indices = @transform_2, window_bounds = array<i64: 96, 144>}, {pipeline_mode = #tpu.pipeline_mode<synchronous>, transform_indices = @transform_3, window_bounds = array<i64: 96, 1>}, {pipeline_mode = #tpu.pipeline_mode<synchronous>, transform_indices = @transform_4, window_bounds = array<i64: 32, 144>}, {pipeline_mode = #tpu.pipeline_mode<synchronous>, transform_indices = @transform_5, window_bounds = array<i64: 32, 1>}, {transform_indices = @transform_6, window_bounds = array<i64: 1, 96, 36>}, {transform_indices = @transform_7, window_bounds = array<i64: 1, 32, 196>}]} {
    %c0 = arith.constant 0 : index
    %c0_0 = arith.constant 0 : index
    %0 = vector.load %arg3[%c0, %c0_0] : memref<96x144xf32, #tpu.memory_space<vmem>>, vector<96x144xf32>
    %c0_1 = arith.constant 0 : index
    %c0_2 = arith.constant 0 : index
    %c0_3 = arith.constant 0 : index
    %1 = vector.load %arg1[%c0_1, %c0_2, %c0_3] : memref<1x144x36xf32, #tpu.memory_space<vmem>>, vector<1x144x36xf32>
    %2 = vector.shape_cast %1 : vector<1x144x36xf32> to vector<144x36xf32>
    %cst = arith.constant dense<0.000000e+00> : vector<96x36xf32>
    %3 = tpu.matmul %0, %2, %cst {dimension_numbers = #tpu.dot_dimension_numbers<[1], [0], [0], [1], [0, 0, 1, 1], [], []>} : vector<96x144xf32>, vector<144x36xf32>, vector<96x36xf32> -> vector<96x36xf32>
    %c0_4 = arith.constant 0 : index
    %c0_5 = arith.constant 0 : index
    %4 = vector.load %arg4[%c0_4, %c0_5] : memref<96x1xf32, #tpu.memory_space<vmem>>, vector<96x1xf32>
    %5 = vector.broadcast %4 : vector<96x1xf32> to vector<96x36xf32>
    %6 = arith.addf %3, %5 : vector<96x36xf32>
    %c0_6 = arith.constant 0 : index
    %c0_7 = arith.constant 0 : index
    %c0_8 = arith.constant 0 : index
    %7 = vector.load %arg7[%c0_6, %c0_7, %c0_8] : memref<1x96x36xf32, #tpu.memory_space<vmem>>, vector<1x96x36xf32>
    %8 = vector.shape_cast %7 : vector<1x96x36xf32> to vector<96x36xf32>
    %9 = vector.shape_cast %6 : vector<96x36xf32> to vector<1x96x36xf32>
    tpu.vector_store %arg7[%c0_6, %c0_7, %c0_8], %9 {strides = array<i32>} : memref<1x96x36xf32, #tpu.memory_space<vmem>>, vector<1x96x36xf32>,
    %c0_9 = arith.constant 0 : index
    %c0_10 = arith.constant 0 : index
    %10 = vector.load %arg5[%c0_9, %c0_10] : memref<32x144xf32, #tpu.memory_space<vmem>>, vector<32x144xf32>
    %c0_11 = arith.constant 0 : index
    %c0_12 = arith.constant 0 : index
    %c0_13 = arith.constant 0 : index
    %11 = vector.load %arg2[%c0_11, %c0_12, %c0_13] : memref<1x144x196xf32, #tpu.memory_space<vmem>>, vector<1x144x196xf32>
    %12 = vector.shape_cast %11 : vector<1x144x196xf32> to vector<144x196xf32>
    %cst_14 = arith.constant dense<0.000000e+00> : vector<32x196xf32>
    %13 = tpu.matmul %10, %12, %cst_14 {dimension_numbers = #tpu.dot_dimension_numbers<[1], [0], [0], [1], [0, 0, 1, 1], [], []>} : vector<32x144xf32>, vector<144x196xf32>, vector<32x196xf32> -> vector<32x196xf32>
    %c0_15 = arith.constant 0 : index
    %c0_16 = arith.constant 0 : index
    %14 = vector.load %arg6[%c0_15, %c0_16] : memref<32x1xf32, #tpu.memory_space<vmem>>, vector<32x1xf32>
    %15 = vector.broadcast %14 : vector<32x1xf32> to vector<32x196xf32>
    %16 = arith.addf %13, %15 : vector<32x196xf32>
    %c0_17 = arith.constant 0 : index
    %c0_18 = arith.constant 0 : index
    %c0_19 = arith.constant 0 : index
    %17 = vector.load %arg8[%c0_17, %c0_18, %c0_19] : memref<1x32x196xf32, #tpu.memory_space<vmem>>, vector<1x32x196xf32>
    %18 = vector.shape_cast %17 : vector<1x32x196xf32> to vector<32x196xf32>
    %19 = vector.shape_cast %16 : vector<32x196xf32> to vector<1x32x196xf32>
    tpu.vector_store %arg8[%c0_17, %c0_18, %c0_19], %19 {strides = array<i32>} : memref<1x32x196xf32, #tpu.memory_space<vmem>>, vector<1x32x196xf32>,
    return
  }
  func.func @transform_0(%arg0: i32) -> (i32, i32, i32) {
    %c0_i32 = arith.constant 0 : i32
    %c0_i32_0 = arith.constant 0 : i32
    %c0_i32_1 = arith.constant 0 : i32
    return %arg0, %c0_i32, %c0_i32_0 : i32, i32, i32
  }
  func.func @transform_1(%arg0: i32) -> (i32, i32, i32) {
    %c0_i32 = arith.constant 0 : i32
    %c0_i32_0 = arith.constant 0 : i32
    %c0_i32_1 = arith.constant 0 : i32
    return %arg0, %c0_i32, %c0_i32_0 : i32, i32, i32
  }
  func.func @transform_2(%arg0: i32) -> (i32, i32) {
    %c0_i32 = arith.constant 0 : i32
    %c0_i32_0 = arith.constant 0 : i32
    %c0_i32_1 = arith.constant 0 : i32
    return %c0_i32, %c0_i32_0 : i32, i32
  }
  func.func @transform_3(%arg0: i32) -> (i32, i32) {
    %c0_i32 = arith.constant 0 : i32
    %c0_i32_0 = arith.constant 0 : i32
    %c0_i32_1 = arith.constant 0 : i32
    return %c0_i32, %c0_i32_0 : i32, i32
  }
  func.func @transform_4(%arg0: i32) -> (i32, i32) {
    %c0_i32 = arith.constant 0 : i32
    %c0_i32_0 = arith.constant 0 : i32
    %c0_i32_1 = arith.constant 0 : i32
    return %c0_i32, %c0_i32_0 : i32, i32
  }
  func.func @transform_5(%arg0: i32) -> (i32, i32) {
    %c0_i32 = arith.constant 0 : i32
    %c0_i32_0 = arith.constant 0 : i32
    %c0_i32_1 = arith.constant 0 : i32
    return %c0_i32, %c0_i32_0 : i32, i32
  }
  func.func @transform_6(%arg0: i32) -> (i32, i32, i32) {
    %c0_i32 = arith.constant 0 : i32
    %c0_i32_0 = arith.constant 0 : i32
    %c0_i32_1 = arith.constant 0 : i32
    return %arg0, %c0_i32, %c0_i32_0 : i32, i32, i32
  }
  func.func @transform_7(%arg0: i32) -> (i32, i32, i32) {
    %c0_i32 = arith.constant 0 : i32
    %c0_i32_0 = arith.constant 0 : i32
    %c0_i32_1 = arith.constant 0 : i32
    return %arg0, %c0_i32, %c0_i32_0 : i32, i32, i32
  }
}

module attributes {stable_mosaic.version = 11 : i64} {
  func.func @_fused_xcorr_kernel(%arg0: i32, %arg1: memref<1x2x576xf32, #tpu.memory_space<vmem>>, %arg2: memref<1x4x576xf32, #tpu.memory_space<vmem>>, %arg3: memref<1x1152x81xf32, #tpu.memory_space<vmem>>, %arg4: memref<4x4xf32, #tpu.memory_space<vmem>>, %arg5: memref<4x1xf32, #tpu.memory_space<vmem>>, %arg6: memref<1x2x81xf32, #tpu.memory_space<vmem>>, %arg7: memref<1x4x81xf32, #tpu.memory_space<vmem>>) attributes {dimension_semantics = [#tpu.dimension_semantics<parallel>], iteration_bounds = array<i64: 2>, scalar_prefetch = 0 : i64, scratch_operands = 0 : i64, tpu.core_type = #tpu.core_type<tc>, window_params = [{transform_indices = @transform_0, window_bounds = array<i64: 1, 2, 576>}, {transform_indices = @transform_1, window_bounds = array<i64: 1, 4, 576>}, {transform_indices = @transform_2, window_bounds = array<i64: 1, 1152, 81>}, {pipeline_mode = #tpu.pipeline_mode<synchronous>, transform_indices = @transform_3, window_bounds = array<i64: 4, 4>}, {pipeline_mode = #tpu.pipeline_mode<synchronous>, transform_indices = @transform_4, window_bounds = array<i64: 4, 1>}, {transform_indices = @transform_5, window_bounds = array<i64: 1, 2, 81>}, {transform_indices = @transform_6, window_bounds = array<i64: 1, 4, 81>}]} {
    %c0 = arith.constant 0 : index
    %c0_0 = arith.constant 0 : index
    %c0_1 = arith.constant 0 : index
    %0 = vector.load %arg3[%c0, %c0_0, %c0_1] : memref<1x1152x81xf32, #tpu.memory_space<vmem>>, vector<1x576x81xf32>
    %1 = vector.shape_cast %0 : vector<1x576x81xf32> to vector<576x81xf32>
    %c0_2 = arith.constant 0 : index
    %c576 = arith.constant 576 : index
    %c0_3 = arith.constant 0 : index
    %2 = vector.load %arg3[%c0_2, %c576, %c0_3] : memref<1x1152x81xf32, #tpu.memory_space<vmem>>, vector<1x576x81xf32>
    %3 = vector.shape_cast %2 : vector<1x576x81xf32> to vector<576x81xf32>
    %c0_4 = arith.constant 0 : index
    %c0_5 = arith.constant 0 : index
    %c0_6 = arith.constant 0 : index
    %4 = vector.load %arg1[%c0_4, %c0_5, %c0_6] : memref<1x2x576xf32, #tpu.memory_space<vmem>>, vector<1x2x576xf32>
    %5 = vector.shape_cast %4 : vector<1x2x576xf32> to vector<2x576xf32>
    %cst = arith.constant dense<0.000000e+00> : vector<2x81xf32>
    %6 = tpu.matmul %5, %1, %cst {dimension_numbers = #tpu.dot_dimension_numbers<[1], [0], [0], [1], [0, 0, 1, 1], [], []>} : vector<2x576xf32>, vector<576x81xf32>, vector<2x81xf32> -> vector<2x81xf32>
    %c0_7 = arith.constant 0 : index
    %c0_8 = arith.constant 0 : index
    %c0_9 = arith.constant 0 : index
    %7 = vector.load %arg6[%c0_7, %c0_8, %c0_9] : memref<1x2x81xf32, #tpu.memory_space<vmem>>, vector<1x2x81xf32>
    %8 = vector.shape_cast %7 : vector<1x2x81xf32> to vector<2x81xf32>
    %9 = vector.shape_cast %6 : vector<2x81xf32> to vector<1x2x81xf32>
    tpu.vector_store %arg6[%c0_7, %c0_8, %c0_9], %9 {strides = array<i32>} : memref<1x2x81xf32, #tpu.memory_space<vmem>>, vector<1x2x81xf32>,
    %c0_10 = arith.constant 0 : index
    %c0_11 = arith.constant 0 : index
    %c0_12 = arith.constant 0 : index
    %10 = vector.load %arg2[%c0_10, %c0_11, %c0_12] : memref<1x4x576xf32, #tpu.memory_space<vmem>>, vector<1x4x576xf32>
    %11 = vector.shape_cast %10 : vector<1x4x576xf32> to vector<4x576xf32>
    %cst_13 = arith.constant dense<0.000000e+00> : vector<4x81xf32>
    %12 = tpu.matmul %11, %3, %cst_13 {dimension_numbers = #tpu.dot_dimension_numbers<[1], [0], [0], [1], [0, 0, 1, 1], [], []>} : vector<4x576xf32>, vector<576x81xf32>, vector<4x81xf32> -> vector<4x81xf32>
    %c0_14 = arith.constant 0 : index
    %c0_15 = arith.constant 0 : index
    %13 = vector.load %arg4[%c0_14, %c0_15] : memref<4x4xf32, #tpu.memory_space<vmem>>, vector<4x4xf32>
    %c0_16 = arith.constant 0 : index
    %c0_17 = arith.constant 0 : index
    %14 = vector.load %arg5[%c0_16, %c0_17] : memref<4x1xf32, #tpu.memory_space<vmem>>, vector<4x1xf32>
    %15 = vector.extract_strided_slice %13 {offsets = [0, 0], sizes = [4, 1], strides = [1, 1]} : vector<4x4xf32> to vector<4x1xf32>
    %16 = vector.extract_strided_slice %12 {offsets = [0, 0], sizes = [1, 81], strides = [1, 1]} : vector<4x81xf32> to vector<1x81xf32>
    %17 = vector.broadcast %15 : vector<4x1xf32> to vector<4x81xf32>
    %18 = vector.broadcast %16 : vector<1x81xf32> to vector<4x81xf32>
    %19 = arith.mulf %17, %18 : vector<4x81xf32>
    %20 = vector.broadcast %14 : vector<4x1xf32> to vector<4x81xf32>
    %21 = arith.addf %20, %19 : vector<4x81xf32>
    %22 = vector.extract_strided_slice %13 {offsets = [0, 1], sizes = [4, 1], strides = [1, 1]} : vector<4x4xf32> to vector<4x1xf32>
    %23 = vector.extract_strided_slice %12 {offsets = [1, 0], sizes = [1, 81], strides = [1, 1]} : vector<4x81xf32> to vector<1x81xf32>
    %24 = vector.broadcast %22 : vector<4x1xf32> to vector<4x81xf32>
    %25 = vector.broadcast %23 : vector<1x81xf32> to vector<4x81xf32>
    %26 = arith.mulf %24, %25 : vector<4x81xf32>
    %27 = arith.addf %21, %26 : vector<4x81xf32>
    %28 = vector.extract_strided_slice %13 {offsets = [0, 2], sizes = [4, 1], strides = [1, 1]} : vector<4x4xf32> to vector<4x1xf32>
    %29 = vector.extract_strided_slice %12 {offsets = [2, 0], sizes = [1, 81], strides = [1, 1]} : vector<4x81xf32> to vector<1x81xf32>
    %30 = vector.broadcast %28 : vector<4x1xf32> to vector<4x81xf32>
    %31 = vector.broadcast %29 : vector<1x81xf32> to vector<4x81xf32>
    %32 = arith.mulf %30, %31 : vector<4x81xf32>
    %33 = arith.addf %27, %32 : vector<4x81xf32>
    %34 = vector.extract_strided_slice %13 {offsets = [0, 3], sizes = [4, 1], strides = [1, 1]} : vector<4x4xf32> to vector<4x1xf32>
    %35 = vector.extract_strided_slice %12 {offsets = [3, 0], sizes = [1, 81], strides = [1, 1]} : vector<4x81xf32> to vector<1x81xf32>
    %36 = vector.broadcast %34 : vector<4x1xf32> to vector<4x81xf32>
    %37 = vector.broadcast %35 : vector<1x81xf32> to vector<4x81xf32>
    %38 = arith.mulf %36, %37 : vector<4x81xf32>
    %39 = arith.addf %33, %38 : vector<4x81xf32>
    %c0_18 = arith.constant 0 : index
    %c0_19 = arith.constant 0 : index
    %c0_20 = arith.constant 0 : index
    %40 = vector.load %arg7[%c0_18, %c0_19, %c0_20] : memref<1x4x81xf32, #tpu.memory_space<vmem>>, vector<1x4x81xf32>
    %41 = vector.shape_cast %40 : vector<1x4x81xf32> to vector<4x81xf32>
    %42 = vector.shape_cast %39 : vector<4x81xf32> to vector<1x4x81xf32>
    tpu.vector_store %arg7[%c0_18, %c0_19, %c0_20], %42 {strides = array<i32>} : memref<1x4x81xf32, #tpu.memory_space<vmem>>, vector<1x4x81xf32>,
    return
  }
  func.func @transform_0(%arg0: i32) -> (i32, i32, i32) {
    %c0_i32 = arith.constant 0 : i32
    %c0_i32_0 = arith.constant 0 : i32
    %c0_i32_1 = arith.constant 0 : i32
    return %arg0, %c0_i32, %c0_i32_0 : i32, i32, i32
  }
  func.func @transform_1(%arg0: i32) -> (i32, i32, i32) {
    %c0_i32 = arith.constant 0 : i32
    %c0_i32_0 = arith.constant 0 : i32
    %c0_i32_1 = arith.constant 0 : i32
    return %arg0, %c0_i32, %c0_i32_0 : i32, i32, i32
  }
  func.func @transform_2(%arg0: i32) -> (i32, i32, i32) {
    %c0_i32 = arith.constant 0 : i32
    %c0_i32_0 = arith.constant 0 : i32
    %c0_i32_1 = arith.constant 0 : i32
    return %arg0, %c0_i32, %c0_i32_0 : i32, i32, i32
  }
  func.func @transform_3(%arg0: i32) -> (i32, i32) {
    %c0_i32 = arith.constant 0 : i32
    %c0_i32_0 = arith.constant 0 : i32
    %c0_i32_1 = arith.constant 0 : i32
    return %c0_i32, %c0_i32_0 : i32, i32
  }
  func.func @transform_4(%arg0: i32) -> (i32, i32) {
    %c0_i32 = arith.constant 0 : i32
    %c0_i32_0 = arith.constant 0 : i32
    %c0_i32_1 = arith.constant 0 : i32
    return %c0_i32, %c0_i32_0 : i32, i32
  }
  func.func @transform_5(%arg0: i32) -> (i32, i32, i32) {
    %c0_i32 = arith.constant 0 : i32
    %c0_i32_0 = arith.constant 0 : i32
    %c0_i32_1 = arith.constant 0 : i32
    return %arg0, %c0_i32, %c0_i32_0 : i32, i32, i32
  }
  func.func @transform_6(%arg0: i32) -> (i32, i32, i32) {
    %c0_i32 = arith.constant 0 : i32
    %c0_i32_0 = arith.constant 0 : i32
    %c0_i32_1 = arith.constant 0 : i32
    return %arg0, %c0_i32, %c0_i32_0 : i32, i32, i32
  }
}

</mosaic_0001>

<bundles_post_ra>
// kernel: upchannel_ban_forward.2
= control target key start
LH: loop header
LB: loop body
LE: loop exit
PB: predicated region body
PF: predicated region fallthrough
CT: control target
= control target key end

     0   :  { %s1036_s24 = smov 0   ;;  %s1350_s0 = inlined_call_operand.vmem [shape: f32[2,144,36], index: 0, kind: input, shape index: {}]   ;;  %s1351_s1 = inlined_call_operand.vmem [shape: f32[2,144,196], index: 1, kind: input, shape index: {}]   ;;  %s1352_s2 = inlined_call_operand.vmem [shape: f32[96,144], index: 2, kind: input, shape index: {}]   ;;  %s1353_s3 = inlined_call_operand.vmem [shape: f32[96,1], index: 3, kind: input, shape index: {}]   ;;  %s1354_s4 = inlined_call_operand.vmem [shape: f32[32,144], index: 4, kind: input, shape index: {}]   ;;  %s1355_s5 = inlined_call_operand.vmem [shape: f32[32,1], index: 5, kind: input, shape index: {}]   ;;  %s1356_s6 = inlined_call_operand.vmem [shape: f32[2,96,36], index: 6, kind: output, shape index: {0}]   ;;  %s1357_s7 = inlined_call_operand.vmem [shape: f32[2,32,196], index: 7, kind: output, shape index: {1}]  }
   0x1 LB: > { %s879_s25 = sadd.s32 4294967295, %s992_s24   ;;  %p883_p0 = scmp.ge.s32.totalorder %s992_s24, 1  ;;  %s992_s24 = sphi %s1036_s24, %s18_s24  }
   0x2   : > { %p250_p1 = scmp.lt.s32.totalorder %s992_s24, 3 }
   0x4   : > { %p251_p2 = pnand %p883_p0, %p250_p1 }
   0x5   : > { %p292_p3 = scmp.lt.s32.totalorder (!%p251_p2), %s879_s25, 1  ;;  %v313_v0 = vld [vmem:[%s1352_s2 + $0x8] sm:$0xff] (!%p251_p2)  ;;  %vm426_vm0 = vcmask (!%p251_p2), 130048   ;;  %v994_v2 = vmov (!%p251_p2), 0.0|0.0   ;;  %v995_v3 = vmov (!%p251_p2), 0   ;;  %v356_v62 = vld [vmem:[%s1353_s3 + $0x10] sm:$0xff] (!%p251_p2) }
   0x6   : > { %254 = sbr.rel (%p251_p2) target bundleno = 314 (0x13a), region = 44  ;;  %v602_v1 = vld [vmem:[%s1354_s4 + $0x8] sm:$0xff] (!%p251_p2)  ;;  %908 = vmatprep.subr.bf16.mxu0 (!%p251_p2), %v994_v2  ;;  %889 = vmatprep.mubr.msk.f32.mxu0 (!%p251_p2), %vm426_vm0, %v313_v0  ;;  %vm588_vm1 = vcmask (!%p251_p2), 293888   ;;  %vm771_vm2 = vcmask (!%p251_p2), 556032  }
   0x7   : > { %901 = vmatprep.mubr.msk.f32.mxu1 (!%p251_p2), %vm426_vm0, %v602_v1  ;;  %985 = vset.pattern.permute.xlu1 (!%p251_p2), %v995_v3 }
   0x8   : > { %984 = vset.pattern.permute.xlu0 (!%p251_p2), %v995_v3  ;;  %378 = vperm.xlu1 (!%p251_p2), %985, %v356_v62   ;;  %v354_v3 = vld [vmem:[%s1353_s3] sm:$0xff] (!%p251_p2)  ;;  %v330_v62 = vld [vmem:[%s1352_s2 + $0x90] sm:$0xff] (!%p251_p2) }
   0x9   : > { %368 = vperm.xlu0 (!%p251_p2), %984, %v354_v3   ;;  %v334_v3 = vld [vmem:[%s1352_s2 + $0xb0] sm:$0xff] (!%p251_p2) }
   0xd   : > { %s1359_s25 = smov (!%p292_p3, %s879_s25), 1 }
   0xe   : > { %s971_s30 = smul.u32 144, %s1359_s25  ;;  %s907_s26 = sshll.u32 %s1359_s25, 6 }
   0xf   : > { %s972_s8 = smul.u32 288, %s1359_s25  ;;  %s1303_s9 = scalar_lea.vmem %s1357_s7, %s907_s26 }
  0x10   : > { %s1060_s11 = scalar_lea.vmem %s1350_s0, %s971_s30  ;;  %s973_s23 = smul.u32 96, %s1359_s25 }
  0x11   : > { %s1065_s14 = scalar_lea.vmem %s1351_s1, %s972_s8  ;;  %v336_v4 = vld [vmem:[%s1060_s11] sm:$0xff]  ;;  %v337_v5 = vld [vmem:[%s1060_s11 + $0x8] sm:$0xff]  ;;  %v338_v6 = vld [vmem:[%s1060_s11 + $0x10] sm:$0xff] }
  0x12   : > { %v909_v7 = vpack.c.bf16 %v337_v5, %v336_v4  ;;  %v610_v8 = vld [vmem:[%s1065_s14 + $0x8] sm:$0xff]  ;;  %v612_v9 = vld [vmem:[%s1065_s14 + $0x18] sm:$0xff]  ;;  %v609_v10 = vld [vmem:[%s1065_s14] sm:$0xff]  ;;  %s1296_s29 = scalar_lea.vmem %s1356_s6, %s973_s23 }
  0x13   : > { %v935_v11 = vpack.c.bf16 %v612_v9, %v610_v8  ;;  %v611_v12 = vld [vmem:[%s1065_s14 + $0x10] sm:$0xff]  ;;  %v339_v13 = vld [vmem:[%s1060_s11 + $0x18] sm:$0xff]  ;;  %v614_v14 = vld [vmem:[%s1065_s14 + $0x28] sm:$0xff] }
  0x14   : > { %910 = vmatpush1.bf16.msra.mxu0 %v909_v7  ;;  %v937_v15 = vpack.c.bf16 %v611_v12, %v609_v10  ;;  %v912_v16 = vpack.c.bf16 %v339_v13, %v338_v6  ;;  %v616_v17 = vld [vmem:[%s1065_s14 + $0x38] sm:$0xff]  ;;  %v613_v18 = vld [vmem:[%s1065_s14 + $0x20] sm:$0xff]  ;;  %v615_v19 = vld [vmem:[%s1065_s14 + $0x30] sm:$0xff] }
  0x15   : > { %936 = vmatprep.subr.bf16.mxu1 %v935_v11  ;;  %911 = vmatprep.subr.bf16.mxu0 %v994_v2  ;;  %v939_v20 = vpack.c.bf16 %v616_v17, %v614_v14  ;;  %v340_v21 = vld [vmem:[%s1060_s11 + $0x20] sm:$0xff]  ;;  %v341_v22 = vld [vmem:[%s1060_s11 + $0x28] sm:$0xff]  ;;  %v941_v24 = vpack.c.bf16 %v615_v19, %v613_v18  ;;  %v620_v25 = vld [vmem:[%s1065_s14 + $0x58] sm:$0xff] }
  0x16   : > { %v618_v23 = vld [vmem:[%s1065_s14 + $0x48] sm:$0xff]  ;;  %938 = vmatpush1.bf16.msra.mxu1 %v937_v15  ;;  %v617_v27 = vld [vmem:[%s1065_s14 + $0x40] sm:$0xff]  ;;  %v619_v28 = vld [vmem:[%s1065_s14 + $0x50] sm:$0xff]  ;;  %v915_v29 = vpack.c.bf16 %v341_v22, %v340_v21 }
  0x17   : > { %940 = vmatprep.subr.bf16.mxu1 %v939_v20  ;;  %v943_v26 = vpack.c.bf16 %v620_v25, %v618_v23  ;;  %v622_v30 = vld [vmem:[%s1065_s14 + $0x68] sm:$0xff]  ;;  %v624_v31 = vld [vmem:[%s1065_s14 + $0x78] sm:$0xff]  ;;  %v342_v32 = vld [vmem:[%s1060_s11 + $0x30] sm:$0xff]  ;;  %v945_v34 = vpack.c.bf16 %v619_v28, %v617_v27 }
  0x18   : > { %913 = vmatpush1.bf16.msra.mxu0 %v912_v16  ;;  %v343_v33 = vld [vmem:[%s1060_s11 + $0x38] sm:$0xff]  ;;  %v947_v35 = vpack.c.bf16 %v624_v31, %v622_v30  ;;  %v621_v36 = vld [vmem:[%s1065_s14 + $0x60] sm:$0xff]  ;;  %v623_v37 = vld [vmem:[%s1065_s14 + $0x70] sm:$0xff] }
  0x19   : > { %914 = vmatprep.subr.bf16.mxu0 %v994_v2  ;;  %v918_v38 = vpack.c.bf16 %v343_v33, %v342_v32  ;;  %v626_v39 = vld [vmem:[%s1065_s14 + $0x88] sm:$0xff]  ;;  %v628_v40 = vld [vmem:[%s1065_s14 + $0x98] sm:$0xff]  ;;  %v344_v41 = vld [vmem:[%s1060_s11 + $0x40] sm:$0xff]  ;;  %v949_v43 = vpack.c.bf16 %v623_v37, %v621_v36 }
  0x1a   : > { %942 = vmatpush1.bf16.msra.mxu1 %v941_v24  ;;  %v345_v42 = vld [vmem:[%s1060_s11 + $0x48] sm:$0xff]  ;;  %v951_v44 = vpack.c.bf16 %v628_v40, %v626_v39  ;;  %v625_v45 = vld [vmem:[%s1065_s14 + $0x80] sm:$0xff]  ;;  %v627_v46 = vld [vmem:[%s1065_s14 + $0x90] sm:$0xff] }
  0x1b   : > { %944 = vmatprep.subr.bf16.mxu1 %v943_v26  ;;  %v921_v47 = vpack.c.bf16 %v345_v42, %v344_v41  ;;  %v630_v48 = vld [vmem:[%s1065_s14 + $0xa8] sm:$0xff]  ;;  %v632_v49 = vld [vmem:[%s1065_s14 + $0xb8] sm:$0xff]  ;;  %v346_v50 = vld [vmem:[%s1060_s11 + $0x50] sm:$0xff]  ;;  %v953_v52 = vpack.c.bf16 %v627_v46, %v625_v45 }
  0x1c   : > { %916 = vmatpush1.bf16.msra.mxu0 %v915_v29  ;;  %v347_v51 = vld [vmem:[%s1060_s11 + $0x58] sm:$0xff]  ;;  %v955_v53 = vpack.c.bf16 %v632_v49, %v630_v48  ;;  %v629_v54 = vld [vmem:[%s1065_s14 + $0xa0] sm:$0xff]  ;;  %v631_v55 = vld [vmem:[%s1065_s14 + $0xb0] sm:$0xff] }
  0x1d   : > { %917 = vmatprep.subr.bf16.mxu0 %v994_v2  ;;  %v924_v56 = vpack.c.bf16 %v347_v51, %v346_v50  ;;  %v634_v57 = vld [vmem:[%s1065_s14 + $0xc8] sm:$0xff]  ;;  %v636_v58 = vld [vmem:[%s1065_s14 + $0xd8] sm:$0xff]  ;;  %v348_v59 = vld [vmem:[%s1060_s11 + $0x60] sm:$0xff]  ;;  %v957_v61 = vpack.c.bf16 %v631_v55, %v629_v54 }
  0x1e   : > { %946 = vmatpush1.bf16.msra.mxu1 %v945_v34  ;;  %v349_v60 = vld [vmem:[%s1060_s11 + $0x68] sm:$0xff]  ;;  %v959_v63 = vpack.c.bf16 %v636_v58, %v634_v57  ;;  %v633_v0 = vld [vmem:[%s1065_s14 + $0xc0] sm:$0xff]  ;;  %v635_v1 = vld [vmem:[%s1065_s14 + $0xd0] sm:$0xff] }
  0x1f   : > { %948 = vmatprep.subr.bf16.mxu1 %v947_v35  ;;  %v927_v4 = vpack.c.bf16 %v349_v60, %v348_v59  ;;  %v638_v5 = vld [vmem:[%s1065_s14 + $0xe8] sm:$0xff]  ;;  %v640_v6 = vld [vmem:[%s1065_s14 + $0xf8] sm:$0xff]  ;;  %v350_v8 = vld [vmem:[%s1060_s11 + $0x70] sm:$0xff]  ;;  %v961_v11 = vpack.c.bf16 %v635_v1, %v633_v0 }
  0x20   : > { %919 = vmatpush1.bf16.msra.mxu0 %v918_v38  ;;  %v357_v7 = vld [vmem:[%s1353_s3 + $0x18] sm:$0xff]  ;;  %v355_v10 = vld [vmem:[%s1353_s3 + $0x8] sm:$0xff]  ;;  %v963_v12 = vpack.c.bf16 %v640_v6, %v638_v5  ;;  %v637_v13 = vld [vmem:[%s1065_s14 + $0xe0] sm:$0xff] }
  0x21   : > { %920 = vmatprep.subr.bf16.mxu0 %v994_v2  ;;  %v351_v9 = vld [vmem:[%s1060_s11 + $0x78] sm:$0xff]  ;;  %v639_v14 = vld [vmem:[%s1065_s14 + $0xf0] sm:$0xff]  ;;  %383 = vperm.xlu1 %985, %v357_v7   ;;  %v642_v16 = vld [vmem:[%s1065_s14 + $0x108] sm:$0xff] }
  0x22   : > { %950 = vmatpush1.bf16.msra.mxu1 %v949_v43  ;;  %v930_v15 = vpack.c.bf16 %v351_v9, %v350_v8  ;;  %v644_v17 = vld [vmem:[%s1065_s14 + $0x118] sm:$0xff]  ;;  %373 = vperm.xlu0 %984, %v355_v10   ;;  %v359_v18 = vld [vmem:[%s1353_s3 + $0x28] sm:$0xff]  ;;  %v352_v19 = vld [vmem:[%s1060_s11 + $0x80] sm:$0xff]  ;;  %v965_v22 = vpack.c.bf16 %v639_v14, %v637_v13 }
  0x23   : > { %952 = vmatprep.subr.bf16.mxu1 %v951_v44  ;;  %v353_v20 = vld [vmem:[%s1060_s11 + $0x88] sm:$0xff]  ;;  %v358_v21 = vld [vmem:[%s1353_s3 + $0x20] sm:$0xff]  ;;  %v967_v23 = vpack.c.bf16 %v644_v17, %v642_v16  ;;  %v643_v25 = vld [vmem:[%s1065_s14 + $0x110] sm:$0xff] }
  0x24   : > { %922 = vmatpush1.bf16.msra.mxu0 %v921_v47  ;;  %v641_v24 = vld [vmem:[%s1065_s14 + $0x100] sm:$0xff]  ;;  %v933_v26 = vpack.c.bf16 %v353_v20, %v352_v19  ;;  %v361_v27 = vld [vmem:[%s1353_s3 + $0x38] sm:$0xff]  ;;  %v360_v28 = vld [vmem:[%s1353_s3 + $0x30] sm:$0xff] }
  0x25   : > { %923 = vmatprep.subr.bf16.mxu0 %v994_v2  ;;  %393 = vperm.xlu1 %985, %v359_v18   ;;  %v969_v29 = vpack.c.bf16 %v643_v25, %v641_v24  ;;  %v312_v30 = vld [vmem:[%s1352_s2] sm:$0xff]  ;;  %v363_v31 = vld [vmem:[%s1353_s3 + $0x48] sm:$0xff]  ;;  %v604_v34 = vld [vmem:[%s1354_s4 + $0x18] sm:$0xff] }
  0x26   : > { %954 = vmatpush1.bf16.msra.mxu1 %v953_v52  ;;  %388 = vperm.xlu0 %984, %v358_v21   ;;  %v362_v32 = vld [vmem:[%s1353_s3 + $0x40] sm:$0xff]  ;;  %v314_v35 = vld [vmem:[%s1352_s2 + $0x10] sm:$0xff]  ;;  %v365_v36 = vld [vmem:[%s1353_s3 + $0x58] sm:$0xff] }
  0x27   : > { %956 = vmatprep.subr.bf16.mxu1 %v955_v53  ;;  %v601_v33 = vld [vmem:[%s1354_s4] sm:$0xff]  ;;  %v317_v37 = vld [vmem:[%s1352_s2 + $0x28] sm:$0xff]  ;;  %v364_v38 = vld [vmem:[%s1353_s3 + $0x50] sm:$0xff] }
  0x28   : > { %925 = vmatpush1.bf16.msra.mxu0 %v924_v56  ;;  %v603_v39 = vld [vmem:[%s1354_s4 + $0x10] sm:$0xff]  ;;  %v606_v40 = vld [vmem:[%s1354_s4 + $0x28] sm:$0xff]  ;;  %v316_v41 = vld [vmem:[%s1352_s2 + $0x20] sm:$0xff] }
  0x29   : > { %926 = vmatprep.subr.bf16.mxu0 %v994_v2  ;;  %403 = vperm.xlu1 %985, %v361_v27   ;;  %v646_v42 = vld [vmem:[%s1355_s5 + $0x8] sm:$0xff]  ;;  %v319_v43 = vld [vmem:[%s1352_s2 + $0x38] sm:$0xff]  ;;  %v645_v44 = vld [vmem:[%s1355_s5] sm:$0xff] }
  0x2a   : > { %958 = vmatpush1.bf16.msra.mxu1 %v957_v61  ;;  %398 = vperm.xlu0 %984, %v360_v28   ;;  %v605_v45 = vld [vmem:[%s1354_s4 + $0x20] sm:$0xff]  ;;  %v608_v46 = vld [vmem:[%s1354_s4 + $0x38] sm:$0xff]  ;;  %v318_v47 = vld [vmem:[%s1352_s2 + $0x30] sm:$0xff] }
  0x2b   : > { %960 = vmatprep.subr.bf16.mxu1 %v959_v63  ;;  %v648_v48 = vld [vmem:[%s1355_s5 + $0x18] sm:$0xff]  ;;  %v321_v49 = vld [vmem:[%s1352_s2 + $0x48] sm:$0xff]  ;;  %v647_v50 = vld [vmem:[%s1355_s5 + $0x10] sm:$0xff] }
  0x2c   : > { %928 = vmatpush1.bf16.msra.mxu0 %v927_v4  ;;  %v607_v51 = vld [vmem:[%s1354_s4 + $0x30] sm:$0xff]  ;;  %v320_v52 = vld [vmem:[%s1352_s2 + $0x40] sm:$0xff]  ;;  %v323_v53 = vld [vmem:[%s1352_s2 + $0x58] sm:$0xff] }
  0x2d   : > { %929 = vmatprep.subr.bf16.mxu0 %v994_v2  ;;  %413 = vperm.xlu1 %985, %v363_v31   ;;  %v322_v54 = vld [vmem:[%s1352_s2 + $0x50] sm:$0xff]  ;;  %v325_v55 = vld [vmem:[%s1352_s2 + $0x68] sm:$0xff]  ;;  %v324_v56 = vld [vmem:[%s1352_s2 + $0x60] sm:$0xff] }
  0x2e   : > { %962 = vmatpush1.bf16.msra.mxu1 %v961_v11  ;;  %408 = vperm.xlu0 %984, %v362_v32   ;;  %v327_v57 = vld [vmem:[%s1352_s2 + $0x78] sm:$0xff]  ;;  %v326_v58 = vld [vmem:[%s1352_s2 + $0x70] sm:$0xff]  ;;  %v329_v59 = vld [vmem:[%s1352_s2 + $0x88] sm:$0xff] }
  0x2f   : > { %964 = vmatprep.subr.bf16.mxu1 %v963_v12  ;;  %v328_v60 = vld [vmem:[%s1352_s2 + $0x80] sm:$0xff]  ;;  %v331_v61 = vld [vmem:[%s1352_s2 + $0x98] sm:$0xff]  ;;  %v333_v63 = vld [vmem:[%s1352_s2 + $0xa8] sm:$0xff] }
  0x30   : > { %931 = vmatpush1.bf16.msra.mxu0 %v930_v15  ;;  %v332_v0 = vld [vmem:[%s1352_s2 + $0xa0] sm:$0xff]  ;;  %v335_v1 = vld [vmem:[%s1352_s2 + $0xb8] sm:$0xff] }
  0x31   : > { %932 = vmatprep.subr.bf16.mxu0 %v994_v2  ;;  %v315_v2 = vld [vmem:[%s1352_s2 + $0x18] sm:$0xff]  ;;  %423 = vperm.xlu1 %985, %v365_v36  }
  0x32   : > { %966 = vmatpush1.bf16.msra.mxu1 %v965_v22  ;;  %418 = vperm.xlu0 %984, %v364_v38  }
  0x33   : > { %968 = vmatprep.subr.bf16.mxu1 %v967_v23 }
  0x34   : > { %934 = vmatpush1.bf16.msra.mxu0 %v933_v26 }
  0x35   : > { %656 = vperm.xlu1 %985, %v646_v42  }
  0x36   : > { %970 = vmatpush1.bf16.msra.mxu1 %v969_v29  ;;  %651 = vperm.xlu0 %984, %v645_v44  }
  0x37   : > { %528 = vmatmul.mubr.f32.vlgmr.msra.gmra.mrb[0].mxu0 %v312_v30 }
  0x38   : > { %890 = vmatprep.mubr.msk.f32.mxu0 %vm426_vm0, %v315_v2 }
  0x39   : > { %746 = vmatmul.mubr.f32.vlgmr.msra.gmra.mrb[0].mxu1 %v601_v33  ;;  %666 = vperm.xlu1 %985, %v648_v48  }
  0x3a   : > { %902 = vmatprep.mubr.msk.f32.mxu1 %vm426_vm0, %v604_v34  ;;  %661 = vperm.xlu0 %984, %v647_v50  }
  0x3b   : > { %533 = vmatmul.mubr.f32.gmra.mrb[2].mxu0 %v314_v35 }
  0x3c   : > { %891 = vmatprep.mubr.msk.f32.mxu0 %vm426_vm0, %v317_v37 }
  0x3d   : > { %752 = vmatmul.mubr.f32.gmra.mrb[2].mxu1 %v603_v39 }
  0x3e   : > { %903 = vmatprep.mubr.msk.f32.mxu1 %vm426_vm0, %v606_v40 }
  0x3f   : > { %538 = vmatmul.mubr.f32.gmra.mrb[4].mxu0 %v316_v41 }
  0x40   : > { %892 = vmatprep.mubr.msk.f32.mxu0 %vm426_vm0, %v319_v43 }
  0x41   : > { %758 = vmatmul.mubr.f32.gmra.mrb[4].mxu1 %v605_v45 }
  0x42   : > { %904 = vmatprep.mubr.msk.f32.mxu1 %vm426_vm0, %v608_v46 }
  0x43   : > { %543 = vmatmul.mubr.f32.gmra.mrb[6].mxu0 %v318_v47 }
  0x44   : > { %893 = vmatprep.mubr.msk.f32.mxu0 %vm426_vm0, %v321_v49 }
  0x45   : > { %764 = vmatmul.mubr.f32.gmra.mrb[6].mxu1 %v607_v51 }
  0x47   : > { %548 = vmatmul.mubr.f32.gmra.mrb[8].mxu0 %v320_v52 }
  0x48   : > { %894 = vmatprep.mubr.msk.f32.mxu0 %vm426_vm0, %v323_v53 }
  0x4b   : > { %553 = vmatmul.mubr.f32.gmra.mrb[10].mxu0 %v322_v54 }
  0x4c   : > { %895 = vmatprep.mubr.msk.f32.mxu0 %vm426_vm0, %v325_v55 }
  0x4f   : > { %558 = vmatmul.mubr.f32.gmra.mrb[12].mxu0 %v324_v56 }
  0x50   : > { %896 = vmatprep.mubr.msk.f32.mxu0 %vm426_vm0, %v327_v57 }
  0x53   : > { %563 = vmatmul.mubr.f32.gmra.mrb[14].mxu0 %v326_v58 }
  0x54   : > { %897 = vmatprep.mubr.msk.f32.mxu0 %vm426_vm0, %v329_v59 }
  0x57   : > { %568 = vmatmul.mubr.f32.gmra.mrb[16].mxu0 %v328_v60 }
  0x58   : > { %898 = vmatprep.mubr.msk.f32.mxu0 %vm426_vm0, %v331_v61 }
  0x5b   : > { %573 = vmatmul.mubr.f32.gmra.mrb[18].mxu0 %v330_v62 }
  0x5c   : > { %899 = vmatprep.mubr.msk.f32.mxu0 %vm426_vm0, %v333_v63 }
  0x5f   : > { %578 = vmatmul.mubr.f32.gmra.mrb[20].mxu0 %v332_v0 }
  0x60   : > { %900 = vmatprep.mubr.msk.f32.mxu0 %vm426_vm0, %v335_v1 }
  0x63   : > { %583 = vmatmul.mubr.f32.gmra.mrb[22].mxu0 %v334_v3 }
  0x87   : > { %v379_v5 = vpop.permute.xlu1 %378 }
  0x88   : > { %v369_v4 = vpop.permute.xlu0 %368 }
  0xa0   : > { %v384_v7 = vpop.permute.xlu1 %383 }
  0xa1   : > { %v374_v6 = vpop.permute.xlu0 %373 }
  0xa4   : > { %v394_v9 = vpop.permute.xlu1 %393 }
  0xa5   : > { %v389_v8 = vpop.permute.xlu0 %388 }
  0xa8   : > { %v1283_v11 = vpop.permute.xlu1 %403 }
  0xa9   : > { %v1281_v10 = vpop.permute.xlu0 %398 }
  0xac   : > { %v1287_v13 = vpop.permute.xlu1 %413 }
  0xad   : > { %v1285_v12 = vpop.permute.xlu0 %408 }
  0xb0   : > { %v1298_v16 = vpop.permute.xlu1 %423 }
  0xb1   : > { %v1290_v14 = vpop.permute.xlu0 %418 }
  0xb4   : > { %v657_v28 = vpop.permute.xlu1 %656 }
  0xb5   : > { %v652_v20 = vpop.permute.xlu0 %651 }
  0xb8   : > { %v667_v39 = vpop.permute.xlu1 %666 }
  0xb9   : > { %v662_v32 = vpop.permute.xlu0 %661 }
 0x10a   : > { %v529_v15 = vpop.f32.mrb[0].mxu0 }
 0x10b   : > { %v530_v17 = vadd.f32 %v529_v15, %v369_v4  ;;  %v531_v18 = vpop.f32.mrb[1].mxu0 }
 0x10c   : > { %v747_v19 = vpop.f32.mrb[0].mxu1 }
 0x10d   : > { %589 = vst.msk [vmem:[%s1296_s29] sm:$0xff] %vm588_vm1, %v530_v17  ;;  %v749_v21 = vpop.f32.mrb[1].mxu1  ;;  %v748_v22 = vadd.f32 %v747_v19, %v652_v20 }
 0x10e   : > { %v534_v23 = vpop.f32.mrb[2].mxu0  ;;  %v750_v24 = vadd.f32 %v749_v21, %v652_v20 }
 0x10f   : > { %v535_v25 = vadd.f32 %v534_v23, %v374_v6  ;;  %v536_v26 = vpop.f32.mrb[3].mxu0  ;;  %770 = vst [vmem:[%s1303_s9] sm:$0xff] %v748_v22 }
 0x110   : > { %v753_v27 = vpop.f32.mrb[2].mxu1  ;;  %772 = vst.msk [vmem:[%s1303_s9 + $0x8] sm:$0xff] %vm771_vm2, %v750_v24 }
 0x111   : > { %590 = vst.msk [vmem:[%s1296_s29 + $0x8] sm:$0xff] %vm588_vm1, %v535_v25  ;;  %v754_v29 = vadd.f32 %v753_v27, %v657_v28  ;;  %v755_v30 = vpop.f32.mrb[3].mxu1 }
 0x112   : > { %v539_v31 = vpop.f32.mrb[4].mxu0  ;;  %v756_v2 = vadd.f32 %v755_v30, %v657_v28 }
 0x113   : > { %v540_v33 = vadd.f32 %v539_v31, %v379_v5  ;;  %v541_v34 = vpop.f32.mrb[5].mxu0  ;;  %773 = vst [vmem:[%s1303_s9 + $0x10] sm:$0xff] %v754_v29 }
 0x114   : > { %774 = vst.msk [vmem:[%s1303_s9 + $0x18] sm:$0xff] %vm771_vm2, %v756_v2  ;;  %v759_v35 = vpop.f32.mrb[4].mxu1 }
 0x115   : > { %591 = vst.msk [vmem:[%s1296_s29 + $0x10] sm:$0xff] %vm588_vm1, %v540_v33  ;;  %v761_v36 = vpop.f32.mrb[5].mxu1  ;;  %v760_v37 = vadd.f32 %v759_v35, %v662_v32 }
 0x116   : > { %v544_v38 = vpop.f32.mrb[6].mxu0  ;;  %v762_v40 = vadd.f32 %v761_v36, %v662_v32 }
 0x117   : > { %v545_v41 = vadd.f32 %v544_v38, %v384_v7  ;;  %v546_v42 = vpop.f32.mrb[7].mxu0  ;;  %775 = vst [vmem:[%s1303_s9 + $0x20] sm:$0xff] %v760_v37 }
 0x118   : > { %v765_v43 = vpop.f32.mrb[6].mxu1  ;;  %776 = vst.msk [vmem:[%s1303_s9 + $0x28] sm:$0xff] %vm771_vm2, %v762_v40 }
 0x119   : > { %592 = vst.msk [vmem:[%s1296_s29 + $0x18] sm:$0xff] %vm588_vm1, %v545_v41  ;;  %v766_v44 = vadd.f32 %v765_v43, %v667_v39  ;;  %v767_v45 = vpop.f32.mrb[7].mxu1 }
 0x11a   : > { %v549_v46 = vpop.f32.mrb[8].mxu0  ;;  %v768_v47 = vadd.f32 %v767_v45, %v667_v39 }
 0x11b   : > { %777 = vst [vmem:[%s1303_s9 + $0x30] sm:$0xff] %v766_v44  ;;  %v550_v48 = vadd.f32 %v549_v46, %v389_v8  ;;  %v551_v49 = vpop.f32.mrb[9].mxu0 }
 0x11c   : > { %778 = vst.msk [vmem:[%s1303_s9 + $0x38] sm:$0xff] %vm771_vm2, %v768_v47 }
 0x11d   : > { %593 = vst.msk [vmem:[%s1296_s29 + $0x20] sm:$0xff] %vm588_vm1, %v550_v48 }
 0x11e   : > { %v554_v50 = vpop.f32.mrb[10].mxu0 }
 0x11f   : > { %v555_v51 = vadd.f32 %v554_v50, %v394_v9  ;;  %v556_v52 = vpop.f32.mrb[11].mxu0 }
 0x121   : > { %594 = vst.msk [vmem:[%s1296_s29 + $0x28] sm:$0xff] %vm588_vm1, %v555_v51 }
 0x122   : > { %v559_v53 = vpop.f32.mrb[12].mxu0 }
 0x123   : > { %v560_v54 = vadd.f32 %v559_v53, %v1281_v10  ;;  %v561_v55 = vpop.f32.mrb[13].mxu0 }
 0x125   : > { %595 = vst.msk [vmem:[%s1296_s29 + $0x30] sm:$0xff] %vm588_vm1, %v560_v54 }
 0x126   : > { %v564_v56 = vpop.f32.mrb[14].mxu0 }
 0x127   : > { %v565_v57 = vadd.f32 %v564_v56, %v1283_v11  ;;  %v566_v58 = vpop.f32.mrb[15].mxu0 }
 0x129   : > { %596 = vst.msk [vmem:[%s1296_s29 + $0x38] sm:$0xff] %vm588_vm1, %v565_v57 }
 0x12a   : > { %v569_v59 = vpop.f32.mrb[16].mxu0 }
 0x12b   : > { %v570_v60 = vadd.f32 %v569_v59, %v1285_v12  ;;  %v571_v61 = vpop.f32.mrb[17].mxu0 }
 0x12d   : > { %597 = vst.msk [vmem:[%s1296_s29 + $0x40] sm:$0xff] %vm588_vm1, %v570_v60 }
 0x12e   : > { %v574_v62 = vpop.f32.mrb[18].mxu0 }
 0x12f   : > { %v575_v63 = vadd.f32 %v574_v62, %v1287_v13  ;;  %v576_v0 = vpop.f32.mrb[19].mxu0 }
 0x131   : > { %598 = vst.msk [vmem:[%s1296_s29 + $0x48] sm:$0xff] %vm588_vm1, %v575_v63 }
 0x132   : > { %v579_v1 = vpop.f32.mrb[20].mxu0 }
 0x133   : > { %v580_v3 = vadd.f32 %v579_v1, %v1290_v14  ;;  %v581_v4 = vpop.f32.mrb[21].mxu0 }
 0x135   : > { %599 = vst.msk [vmem:[%s1296_s29 + $0x50] sm:$0xff] %vm588_vm1, %v580_v3 }
 0x136   : > { %v584_v5 = vpop.f32.mrb[22].mxu0 }
 0x137   : > { %v585_v6 = vadd.f32 %v584_v5, %v1298_v16  ;;  %v586_v7 = vpop.f32.mrb[23].mxu0 }
 0x139   : > { %600 = vst.msk [vmem:[%s1296_s29 + $0x58] sm:$0xff] %vm588_vm1, %v585_v6 }
 0x13a PF: > { %s18_s24 = sadd.s32 1, %s992_s24  }
 0x13b   : > { %p15_p4 = scmp.ge.s32.totalorder %s18_s24, 4  }
 0x13d   :  { %17 = sbr.rel (!%p15_p4) target bundleno = 1 (0x1), region = 89 }

// kernel: upchannel_ban_forward.3
= control target key start
LH: loop header
LB: loop body
LE: loop exit
PB: predicated region body
PF: predicated region fallthrough
CT: control target
= control target key end

     0   :  { %s1512_s21 = smov 0   ;;  %s1737_s0 = inlined_call_operand.vmem [shape: f32[2,2,576], index: 0, kind: input, shape index: {}]   ;;  %s1738_s1 = inlined_call_operand.vmem [shape: f32[2,4,576], index: 1, kind: input, shape index: {}]   ;;  %s1739_s2 = inlined_call_operand.vmem [shape: f32[2,1152,81], index: 2, kind: input, shape index: {}]   ;;  %s1740_s3 = inlined_call_operand.vmem [shape: f32[4,4], index: 3, kind: input, shape index: {}]   ;;  %s1741_s4 = inlined_call_operand.vmem [shape: f32[4,1], index: 4, kind: input, shape index: {}]   ;;  %s1742_s5 = inlined_call_operand.vmem [shape: f32[2,2,81], index: 5, kind: output, shape index: {0}]   ;;  %s1743_s6 = inlined_call_operand.vmem [shape: f32[2,4,81], index: 6, kind: output, shape index: {1}]  }
   0x1 LB: > { %s1072_s22 = sadd.s32 4294967295, %s1467_s21   ;;  %p1076_p0 = scmp.ge.s32.totalorder %s1467_s21, 1  ;;  %s1467_s21 = sphi %s1512_s21, %s17_s21  }
   0x2   : > { %p235_p1 = scmp.lt.s32.totalorder %s1467_s21, 3 }
   0x4   : > { %p236_p2 = pnand %p1076_p0, %p235_p1 }
   0x5   : > { %p278_p3 = scmp.lt.s32.totalorder (!%p236_p2), %s1072_s22, 1  ;;  %v914_v0 = vld [vmem:[%s1740_s3] sm:$0xf] (!%p236_p2)  ;;  %v1469_v1 = vmov (!%p236_p2), 0   ;;  %v1470_v2 = vmov (!%p236_p2), 1   ;;  %v1471_v11 = vmov (!%p236_p2), 2   ;;  %v453_v55 = vlaneseq (!%p236_p2) }
   0x6   : > { %239 = sbr.rel (%p236_p2) target bundleno = 333 (0x14d), region = 40  ;;  %1454 = vset.pattern.permute.xlu0 (!%p236_p2), %v1469_v1  ;;  %1455 = vset.pattern.permute.xlu1 (!%p236_p2), %v1470_v2  ;;  %v915_v3 = vld [vmem:[%s1741_s4] sm:$0xf] (!%p236_p2)  ;;  %v1472_v30 = vmov (!%p236_p2), 3   ;;  %v1473_v53 = vmov (!%p236_p2), 1983009808  }
   0x7   : > { %918 = vperm.xlu0 (!%p236_p2), %1454, %v914_v0   ;;  %933 = vperm.xlu1 (!%p236_p2), %1455, %v914_v0   ;;  %v451_v54 = vunpack.c.l.s4 (!%p236_p2), %v1473_v53  ;;  %vm1475_vm0 = vmmov (!%p236_p2), 0   ;;  %vm477_vm1 = vcmask (!%p236_p2), 523264   ;;  %vm690_vm2 = vcmask (!%p236_p2), 656384  }
   0x8   : > { %vm962_vm3 = vcmask (!%p236_p2), 658432  }
   0xb   : > { %928 = vperm.xlu0 (!%p236_p2), %1454, %v915_v3   ;;  %1456 = vset.pattern.permute.xlu1 (!%p236_p2), %v1471_v11 }
   0xc   : > { %943 = vperm.xlu1 (!%p236_p2), %1456, %v914_v0  }
   0xd   : > { %s1745_s22 = smov (!%p278_p3, %s1072_s22), 1 }
   0xe   : > { %s1437_s25 = smul.u32 1152, %s1745_s22  ;;  %s1080_s15 = sshll.u32 %s1745_s22, 1 }
   0xf   : > { %1457 = vset.pattern.permute.xlu0 %v1472_v30  ;;  %s1435_s7 = smul.u32 10, %s1745_s22  ;;  %s296_s18 = scalar_lea.vmem %s1742_s5, %s1080_s15 }
  0x10   : > { %s1532_s30 = scalar_lea.vmem %s1739_s2, %s1437_s25  ;;  %953 = vperm.xlu0 %1457, %v914_v0   ;;  %s1436_s11 = smul.u32 20, %s1745_s22 }
  0x11   : > { %v317_v4 = vld [vmem:[%s1532_s30 + $0x80] sm:$0xff]  ;;  %v318_v5 = vld [vmem:[%s1532_s30 + $0x88] sm:$0xff]  ;;  %v319_v16 = vld [vmem:[%s1532_s30 + $0x90] sm:$0xff]  ;;  %s1590_s10 = scalar_lea.vmem %s1737_s0, %s1435_s7  ;;  %s1081_s19 = sshll.u32 %s1745_s22, 2 }
  0x12   : > { %v349_v6 = vld [vmem:[%s1532_s30 + $0x180] sm:$0xff]  ;;  %v1283_v7 = vpack.c.bf16 %v318_v5, %v317_v4  ;;  %v350_v8 = vld [vmem:[%s1532_s30 + $0x188] sm:$0xff]  ;;  %v320_v18 = vld [vmem:[%s1532_s30 + $0x98] sm:$0xff]  ;;  %v452_v5 = vunpack.c.0.s8 %v451_v54  ;;  %s1636_s14 = scalar_lea.vmem %s1738_s1, %s1436_s11  ;;  %s300_s24 = scalar_lea.vmem %s1743_s6, %s1081_s19 }
  0x13   : > { %v301_v9 = vld [vmem:[%s1532_s30] sm:$0xff]  ;;  %v302_v10 = vld [vmem:[%s1532_s30 + $0x8] sm:$0xff]  ;;  %v1315_v12 = vpack.c.bf16 %v350_v8, %v349_v6  ;;  %v351_v19 = vld [vmem:[%s1532_s30 + $0x190] sm:$0xff]  ;;  %v1287_v21 = vpack.c.bf16 %v320_v18, %v319_v16  ;;  %v1577_v6 = vshrl.u32 %v453_v55, 7 }
  0x14   : > { %v1285_v13 = vpack.c.bf16 %v302_v10, %v301_v9  ;;  %v333_v14 = vld [vmem:[%s1532_s30 + $0x100] sm:$0xff]  ;;  %v334_v15 = vld [vmem:[%s1532_s30 + $0x108] sm:$0xff]  ;;  %1284 = vmatprep.subr.bf16.mxu0 %v1283_v7  ;;  %v352_v20 = vld [vmem:[%s1532_s30 + $0x198] sm:$0xff] }
  0x15   : > { %v1317_v17 = vpack.c.bf16 %v334_v15, %v333_v14  ;;  %1316 = vmatprep.subr.bf16.mxu1 %v1315_v12  ;;  %v1319_v22 = vpack.c.bf16 %v352_v20, %v351_v19  ;;  %v303_v23 = vld [vmem:[%s1532_s30 + $0x10] sm:$0xff]  ;;  %v304_v24 = vld [vmem:[%s1532_s30 + $0x18] sm:$0xff]  ;;  %v321_v28 = vld [vmem:[%s1532_s30 + $0xa0] sm:$0xff]  ;;  %v455_v19 = vsub.s32 %v452_v5, %v1577_v6 }
  0x16   : > { %1286 = vmatpush3.bf16.msra.mxu0 %v1285_v13  ;;  %v335_v25 = vld [vmem:[%s1532_s30 + $0x110] sm:$0xff]  ;;  %v1289_v26 = vpack.c.bf16 %v304_v24, %v303_v23  ;;  %v336_v27 = vld [vmem:[%s1532_s30 + $0x118] sm:$0xff]  ;;  %v322_v29 = vld [vmem:[%s1532_s30 + $0xa8] sm:$0xff] }
  0x17   : > { %1318 = vmatpush3.bf16.msra.mxu1 %v1317_v17  ;;  %1288 = vmatprep.subr.bf16.mxu0 %v1287_v21  ;;  %v1321_v31 = vpack.c.bf16 %v336_v27, %v335_v25  ;;  %v1291_v32 = vpack.c.bf16 %v322_v29, %v321_v28  ;;  %v353_v33 = vld [vmem:[%s1532_s30 + $0x1a0] sm:$0xff]  ;;  %v354_v34 = vld [vmem:[%s1532_s30 + $0x1a8] sm:$0xff]  ;;  %v323_v41 = vld [vmem:[%s1532_s30 + $0xb0] sm:$0xff] }
  0x18   : > { %1320 = vmatprep.subr.bf16.mxu1 %v1319_v22  ;;  %v305_v35 = vld [vmem:[%s1532_s30 + $0x20] sm:$0xff]  ;;  %v1323_v36 = vpack.c.bf16 %v354_v34, %v353_v33  ;;  %v306_v37 = vld [vmem:[%s1532_s30 + $0x28] sm:$0xff]  ;;  %v324_v42 = vld [vmem:[%s1532_s30 + $0xb8] sm:$0xff] }
  0x19   : > { %v337_v38 = vld [vmem:[%s1532_s30 + $0x120] sm:$0xff]  ;;  %v338_v39 = vld [vmem:[%s1532_s30 + $0x128] sm:$0xff]  ;;  %v1293_v40 = vpack.c.bf16 %v306_v37, %v305_v35  ;;  %v355_v43 = vld [vmem:[%s1532_s30 + $0x1b0] sm:$0xff]  ;;  %v1295_v45 = vpack.c.bf16 %v324_v42, %v323_v41 }
  0x1a   : > { %1290 = vmatpush3.bf16.msra.mxu0 %v1289_v26  ;;  %v1325_v44 = vpack.c.bf16 %v338_v39, %v337_v38  ;;  %v356_v46 = vld [vmem:[%s1532_s30 + $0x1b8] sm:$0xff]  ;;  %v307_v47 = vld [vmem:[%s1532_s30 + $0x30] sm:$0xff]  ;;  %v325_v52 = vld [vmem:[%s1532_s30 + $0xc0] sm:$0xff] }
  0x1b   : > { %1322 = vmatpush3.bf16.msra.mxu1 %v1321_v31  ;;  %1292 = vmatprep.subr.bf16.mxu0 %v1291_v32  ;;  %v308_v48 = vld [vmem:[%s1532_s30 + $0x38] sm:$0xff]  ;;  %v1327_v49 = vpack.c.bf16 %v356_v46, %v355_v43  ;;  %v339_v50 = vld [vmem:[%s1532_s30 + $0x130] sm:$0xff]  ;;  %v326_v56 = vld [vmem:[%s1532_s30 + $0xc8] sm:$0xff] }
  0x1c   : > { %1324 = vmatprep.subr.bf16.mxu1 %v1323_v36  ;;  %v340_v51 = vld [vmem:[%s1532_s30 + $0x138] sm:$0xff]  ;;  %v357_v57 = vld [vmem:[%s1532_s30 + $0x1c0] sm:$0xff]  ;;  %v358_v58 = vld [vmem:[%s1532_s30 + $0x1c8] sm:$0xff]  ;;  %v1297_v59 = vpack.c.bf16 %v308_v48, %v307_v47  ;;  %v1299_v61 = vpack.c.bf16 %v326_v56, %v325_v52 }
  0x1d   : > { %v1329_v60 = vpack.c.bf16 %v340_v51, %v339_v50  ;;  %v309_v62 = vld [vmem:[%s1532_s30 + $0x40] sm:$0xff]  ;;  %v310_v63 = vld [vmem:[%s1532_s30 + $0x48] sm:$0xff]  ;;  %v1331_v1 = vpack.c.bf16 %v358_v58, %v357_v57  ;;  %v327_v3 = vld [vmem:[%s1532_s30 + $0xd0] sm:$0xff] }
  0x1e   : > { %1294 = vmatpush3.bf16.msra.mxu0 %v1293_v40  ;;  %v341_v0 = vld [vmem:[%s1532_s30 + $0x140] sm:$0xff]  ;;  %v342_v2 = vld [vmem:[%s1532_s30 + $0x148] sm:$0xff]  ;;  %v328_v4 = vld [vmem:[%s1532_s30 + $0xd8] sm:$0xff]  ;;  %v1301_v9 = vpack.c.bf16 %v310_v63, %v309_v62 }
  0x1f   : > { %1326 = vmatpush3.bf16.msra.mxu1 %v1325_v44  ;;  %1296 = vmatprep.subr.bf16.mxu0 %v1295_v45  ;;  %v359_v7 = vld [vmem:[%s1532_s30 + $0x1d0] sm:$0xff]  ;;  %v360_v8 = vld [vmem:[%s1532_s30 + $0x1d8] sm:$0xff]  ;;  %v1333_v10 = vpack.c.bf16 %v342_v2, %v341_v0  ;;  %v1303_v11 = vpack.c.bf16 %v328_v4, %v327_v3  ;;  %v329_v17 = vld [vmem:[%s1532_s30 + $0xe0] sm:$0xff] }
  0x20   : > { %1328 = vmatprep.subr.bf16.mxu1 %v1327_v49  ;;  %v311_v12 = vld [vmem:[%s1532_s30 + $0x50] sm:$0xff]  ;;  %v312_v13 = vld [vmem:[%s1532_s30 + $0x58] sm:$0xff]  ;;  %v1335_v15 = vpack.c.bf16 %v360_v8, %v359_v7  ;;  %v330_v18 = vld [vmem:[%s1532_s30 + $0xe8] sm:$0xff] }
  0x21   : > { %v343_v14 = vld [vmem:[%s1532_s30 + $0x150] sm:$0xff]  ;;  %v344_v16 = vld [vmem:[%s1532_s30 + $0x158] sm:$0xff]  ;;  %v361_v20 = vld [vmem:[%s1532_s30 + $0x1e0] sm:$0xff]  ;;  %v1305_v22 = vpack.c.bf16 %v312_v13, %v311_v12  ;;  %v1307_v25 = vpack.c.bf16 %v330_v18, %v329_v17  ;;  %v1476_v13 = vmov 0.0  }
  0x22   : > { %1298 = vmatpush3.bf16.msra.mxu0 %v1297_v59  ;;  %v362_v21 = vld [vmem:[%s1532_s30 + $0x1e8] sm:$0xff]  ;;  %v313_v23 = vld [vmem:[%s1532_s30 + $0x60] sm:$0xff]  ;;  %v1337_v24 = vpack.c.bf16 %v344_v16, %v343_v14  ;;  %v331_v31 = vld [vmem:[%s1532_s30 + $0xf0] sm:$0xff] }
  0x23   : > { %1330 = vmatpush3.bf16.msra.mxu1 %v1329_v60  ;;  %1300 = vmatprep.subr.bf16.mxu0 %v1299_v61  ;;  %v314_v26 = vld [vmem:[%s1532_s30 + $0x68] sm:$0xff]  ;;  %v345_v27 = vld [vmem:[%s1532_s30 + $0x160] sm:$0xff]  ;;  %v1339_v29 = vpack.c.bf16 %v362_v21, %v361_v20  ;;  %v332_v32 = vld [vmem:[%s1532_s30 + $0xf8] sm:$0xff]  ;;  %v1474_v60 = vmov 0.0|0.0  }
  0x24   : > { %1332 = vmatprep.subr.bf16.mxu1 %v1331_v1  ;;  %v445_v28 = vld [vmem:[%s1590_s10] sm:$0xff]  ;;  %v346_v30 = vld [vmem:[%s1532_s30 + $0x168] sm:$0xff]  ;;  %v363_v35 = vld [vmem:[%s1532_s30 + $0x1f0] sm:$0xff]  ;;  %v1309_v37 = vpack.c.bf16 %v314_v26, %v313_v23  ;;  %v1311_v41 = vpack.c.bf16 %v332_v32, %v331_v31 }
  0x25   : > { %v456_v33 = vrot.slane %v445_v28, %v455_v19  ;;  %v449_v34 = vcombine.high %v445_v28, %v445_v28  ;;  %v364_v36 = vld [vmem:[%s1532_s30 + $0x1f8] sm:$0xff]  ;;  %v1341_v40 = vpack.c.bf16 %v346_v30, %v345_v27  ;;  %v315_v42 = vld [vmem:[%s1532_s30 + $0x70] sm:$0xff]  ;;  %v389_v48 = vld [vmem:[%s1532_s30 + $0x2c0] sm:$0xff] }
  0x26   : > { %1302 = vmatpush3.bf16.msra.mxu0 %v1301_v9  ;;  %v316_v43 = vld [vmem:[%s1532_s30 + $0x78] sm:$0xff]  ;;  %v1343_v44 = vpack.c.bf16 %v364_v36, %v363_v35  ;;  %v347_v45 = vld [vmem:[%s1532_s30 + $0x170] sm:$0xff]  ;;  %v390_v49 = vld [vmem:[%s1532_s30 + $0x2c8] sm:$0xff] }
  0x27   : > { %1334 = vmatpush3.bf16.msra.mxu1 %v1333_v10  ;;  %1304 = vmatprep.subr.bf16.mxu0 %v1303_v11  ;;  %v464_v38 = vcombine.high %v456_v33, %v456_v33  ;;  %v463_v39 = vrot.slane %v449_v34, %v455_v19  ;;  %v348_v46 = vld [vmem:[%s1532_s30 + $0x178] sm:$0xff]  ;;  %v1313_v50 = vpack.c.bf16 %v316_v43, %v315_v42  ;;  %v365_v52 = vld [vmem:[%s1532_s30 + $0x200] sm:$0xff]  ;;  %v366_v53 = vld [vmem:[%s1532_s30 + $0x208] sm:$0xff] }
  0x28   : > { %1336 = vmatprep.subr.bf16.mxu1 %v1335_v15  ;;  %v1345_v51 = vpack.c.bf16 %v348_v46, %v347_v45  ;;  %v1359_v54 = vpack.c.bf16 %v390_v49, %v389_v48  ;;  %v373_v55 = vld [vmem:[%s1532_s30 + $0x240] sm:$0xff]  ;;  %v374_v56 = vld [vmem:[%s1532_s30 + $0x248] sm:$0xff]  ;;  %v391_v57 = vld [vmem:[%s1532_s30 + $0x2d0] sm:$0xff]  ;;  %v1348_v59 = vpack.c.bf16 %v366_v53, %v365_v52 }
  0x29   : > { %544 = vmatprep.mubr.f32.mxu0 %v464_v38  ;;  %v465_v47 = vcombine.high %v463_v39, %v463_v39  ;;  %v392_v58 = vld [vmem:[%s1532_s30 + $0x2d8] sm:$0xff]  ;;  %v367_v61 = vld [vmem:[%s1532_s30 + $0x210] sm:$0xff]  ;;  %v1361_v63 = vpack.c.bf16 %v374_v56, %v373_v55  ;;  %v393_v3 = vld [vmem:[%s1532_s30 + $0x2e0] sm:$0xff] }
  0x2a   : > { %1306 = vmatpush3.bf16.msra.mxu0 %v1305_v22  ;;  %v368_v62 = vld [vmem:[%s1532_s30 + $0x218] sm:$0xff]  ;;  %v1363_v0 = vpack.c.bf16 %v392_v58, %v391_v57  ;;  %v375_v1 = vld [vmem:[%s1532_s30 + $0x250] sm:$0xff]  ;;  %v394_v4 = vld [vmem:[%s1532_s30 + $0x2e8] sm:$0xff] }
  0x2b   : > { %1338 = vmatpush3.bf16.msra.mxu1 %v1337_v24  ;;  %1308 = vmatprep.subr.bf16.mxu0 %v1307_v25  ;;  %v376_v2 = vld [vmem:[%s1532_s30 + $0x258] sm:$0xff]  ;;  %v1351_v5 = vpack.c.bf16 %v368_v62, %v367_v61  ;;  %v369_v7 = vld [vmem:[%s1532_s30 + $0x220] sm:$0xff]  ;;  %v370_v8 = vld [vmem:[%s1532_s30 + $0x228] sm:$0xff]  ;;  %v1367_v10 = vpack.c.bf16 %v394_v4, %v393_v3 }
  0x2c   : > { %1340 = vmatprep.subr.bf16.mxu1 %v1339_v29  ;;  %614 = vmatprep.mubr.f32.mxu1 %v465_v47  ;;  %v1365_v9 = vpack.c.bf16 %v376_v2, %v375_v1  ;;  %v377_v11 = vld [vmem:[%s1532_s30 + $0x260] sm:$0xff]  ;;  %v378_v12 = vld [vmem:[%s1532_s30 + $0x268] sm:$0xff]  ;;  %v395_v14 = vld [vmem:[%s1532_s30 + $0x2f0] sm:$0xff]  ;;  %v1354_v16 = vpack.c.bf16 %v370_v8, %v369_v7 }
  0x2d   : > { %v396_v15 = vld [vmem:[%s1532_s30 + $0x2f8] sm:$0xff]  ;;  %v371_v17 = vld [vmem:[%s1532_s30 + $0x230] sm:$0xff]  ;;  %v1369_v19 = vpack.c.bf16 %v378_v12, %v377_v11  ;;  %v421_v20 = vld [vmem:[%s1532_s30 + $0x3c0] sm:$0xff] }
  0x2e   : > { %1310 = vmatpush3.bf16.msra.mxu0 %v1309_v37  ;;  %v372_v18 = vld [vmem:[%s1532_s30 + $0x238] sm:$0xff]  ;;  %v422_v21 = vld [vmem:[%s1532_s30 + $0x3c8] sm:$0xff]  ;;  %v1371_v22 = vpack.c.bf16 %v396_v15, %v395_v14  ;;  %v379_v23 = vld [vmem:[%s1532_s30 + $0x270] sm:$0xff] }
  0x2f   : > { %1342 = vmatpush3.bf16.msra.mxu1 %v1341_v40  ;;  %1312 = vmatprep.subr.bf16.mxu0 %v1311_v41  ;;  %v380_v24 = vld [vmem:[%s1532_s30 + $0x278] sm:$0xff]  ;;  %v1646_v25 = vld [vmem:[%s1636_s14] sm:$0xff]  ;;  %v398_v27 = vld [vmem:[%s1532_s30 + $0x308] sm:$0xff]  ;;  %v1357_v29 = vpack.c.bf16 %v372_v18, %v371_v17  ;;  %v1391_v30 = vpack.c.bf16 %v422_v21, %v421_v20 }
  0x30   : > { %1344 = vmatprep.subr.bf16.mxu1 %v1343_v44  ;;  %v397_v26 = vld [vmem:[%s1532_s30 + $0x300] sm:$0xff]  ;;  %v698_v28 = vcombine.high %v1646_v25, %v1646_v25  ;;  %v1373_v31 = vpack.c.bf16 %v380_v24, %v379_v23  ;;  %v423_v34 = vld [vmem:[%s1532_s30 + $0x3d0] sm:$0xff]  ;;  %v424_v36 = vld [vmem:[%s1532_s30 + $0x3d8] sm:$0xff] }
  0x31   : > { %v405_v32 = vld [vmem:[%s1532_s30 + $0x340] sm:$0xff]  ;;  %v1375_v35 = vpack.c.bf16 %v398_v27, %v397_v26  ;;  %v382_v38 = vld [vmem:[%s1532_s30 + $0x288] sm:$0xff]  ;;  %v400_v40 = vld [vmem:[%s1532_s30 + $0x318] sm:$0xff]  ;;  %v1395_v44 = vpack.c.bf16 %v424_v36, %v423_v34 }
  0x32   : > { %1314 = vmatpush3.bf16.msra.mxu0 %v1313_v50  ;;  %v381_v37 = vld [vmem:[%s1532_s30 + $0x280] sm:$0xff]  ;;  %v1082_v41 = vld.sshfl [vmem:[%s1590_s10 + $0x8] sm:$0x3 pattern:$0x76325410]  ;;  %v407_v46 = vld [vmem:[%s1532_s30 + $0x350] sm:$0xff] }
  0x33   : > { %1346 = vmatpush3.bf16.msra.mxu1 %v1345_v51  ;;  %1347 = vmatprep.subr.bf16.mxu0 %v1474_v60  ;;  %v1663_v43 = vld [vmem:[%s1636_s14 + $0x8] sm:$0xff]  ;;  %v1377_v45 = vpack.c.bf16 %v382_v38, %v381_v37  ;;  %v408_v47 = vld [vmem:[%s1532_s30 + $0x358] sm:$0xff]  ;;  %v425_v48 = vld [vmem:[%s1532_s30 + $0x3e0] sm:$0xff] }
  0x34   : > { %1360 = vmatprep.subr.bf16.mxu1 %v1359_v54  ;;  %v699_v49 = vcombine.high %v1663_v43, %v1663_v43  ;;  %v426_v51 = vld [vmem:[%s1532_s30 + $0x3e8] sm:$0xff]  ;;  %v383_v52 = vld [vmem:[%s1532_s30 + $0x290] sm:$0xff]  ;;  %v384_v53 = vld [vmem:[%s1532_s30 + $0x298] sm:$0xff]  ;;  %v1397_v56 = vpack.c.bf16 %v408_v47, %v407_v46 }
  0x35   : > { %545 = vmatmul.mubr.f32.vlgmr.msra.gmra.mrb[0].mxu0 %v456_v33  ;;  %v406_v33 = vld [vmem:[%s1532_s30 + $0x348] sm:$0xff]  ;;  %v401_v54 = vld [vmem:[%s1532_s30 + $0x320] sm:$0xff]  ;;  %v1399_v57 = vpack.c.bf16 %v426_v51, %v425_v48  ;;  %v1381_v58 = vpack.c.bf16 %v384_v53, %v383_v52  ;;  %v427_v62 = vld [vmem:[%s1532_s30 + $0x3f0] sm:$0xff] }
  0x36   : > { %615 = vmatmul.mubr.f32.vlgmr.msra.gmra.mrb[0].mxu1 %v463_v39  ;;  %1349 = vmatpush3.bf16.msra.mxu0 %v1348_v59  ;;  %v399_v39 = vld [vmem:[%s1532_s30 + $0x310] sm:$0xff]  ;;  %v1393_v42 = vpack.c.bf16 %v406_v33, %v405_v32  ;;  %v402_v55 = vld [vmem:[%s1532_s30 + $0x328] sm:$0xff]  ;;  %v409_v59 = vld [vmem:[%s1532_s30 + $0x360] sm:$0xff] }
  0x37   : > { %1350 = vmatprep.subr.bf16.mxu0 %v1474_v60  ;;  %1362 = vmatpush3.bf16.msra.mxu1 %v1361_v63  ;;  %v1379_v50 = vpack.c.bf16 %v400_v40, %v399_v39  ;;  %v410_v61 = vld [vmem:[%s1532_s30 + $0x368] sm:$0xff]  ;;  %v1383_v63 = vpack.c.bf16 %v402_v55, %v401_v54  ;;  %v385_v1 = vld [vmem:[%s1532_s30 + $0x2a0] sm:$0xff]  ;;  %v403_v3 = vld [vmem:[%s1532_s30 + $0x330] sm:$0xff] }
  0x38   : > { %1364 = vmatprep.subr.bf16.mxu1 %v1363_v0  ;;  %1261 = vmatprep.mubr.msk.f32.mxu0 %vm1475_vm0, %v1476_v13  ;;  %v428_v0 = vld [vmem:[%s1532_s30 + $0x3f8] sm:$0xff]  ;;  %v386_v2 = vld [vmem:[%s1532_s30 + $0x2a8] sm:$0xff]  ;;  %v429_v11 = vld [vmem:[%s1532_s30 + $0x400] sm:$0xff] }
  0x39   : > { %768 = vmatprep.mubr.f32.mxu1 %v698_v28  ;;  %v404_v4 = vld [vmem:[%s1532_s30 + $0x338] sm:$0xff]  ;;  %v1403_v7 = vpack.c.bf16 %v428_v0, %v427_v62  ;;  %v1385_v8 = vpack.c.bf16 %v386_v2, %v385_v1  ;;  %v430_v14 = vld [vmem:[%s1532_s30 + $0x408] sm:$0xff]  ;;  %v387_v15 = vld [vmem:[%s1532_s30 + $0x2b0] sm:$0xff] }
  0x3a   : > { %1352 = vmatpush3.bf16.msra.mxu0 %v1351_v5  ;;  %v1401_v5 = vpack.c.bf16 %v410_v61, %v409_v59  ;;  %v1387_v12 = vpack.c.bf16 %v404_v4, %v403_v3  ;;  %v1407_v18 = vpack.c.bf16 %v430_v14, %v429_v11  ;;  %v413_v20 = vld [vmem:[%s1532_s30 + $0x380] sm:$0xff]  ;;  %v414_v21 = vld [vmem:[%s1532_s30 + $0x388] sm:$0xff]  ;;  %v432_v23 = vld [vmem:[%s1532_s30 + $0x418] sm:$0xff]  ;;  %v923_v11 = vsub.s32 0, %v1577_v6 }
  0x3b   : > { %1353 = vmatprep.subr.bf16.mxu0 %v1474_v60  ;;  %1366 = vmatpush3.bf16.msra.mxu1 %v1365_v9  ;;  %v411_v9 = vld [vmem:[%s1532_s30 + $0x370] sm:$0xff]  ;;  %v437_v24 = vld [vmem:[%s1532_s30 + $0x440] sm:$0xff]  ;;  %v438_v26 = vld [vmem:[%s1532_s30 + $0x448] sm:$0xff]  ;;  %v1409_v27 = vpack.c.bf16 %v414_v21, %v413_v20 }
  0x3c   : > { %1368 = vmatprep.subr.bf16.mxu1 %v1367_v10  ;;  %v412_v10 = vld [vmem:[%s1532_s30 + $0x378] sm:$0xff]  ;;  %v433_v32 = vld [vmem:[%s1532_s30 + $0x420] sm:$0xff]  ;;  %v434_v33 = vld [vmem:[%s1532_s30 + $0x428] sm:$0xff] }
  0x3d   : > { %v1405_v17 = vpack.c.bf16 %v412_v10, %v411_v9  ;;  %v439_v34 = vld [vmem:[%s1532_s30 + $0x450] sm:$0xff]  ;;  %v1415_v37 = vpack.c.bf16 %v434_v33, %v433_v32  ;;  %v417_v38 = vld [vmem:[%s1532_s30 + $0x3a0] sm:$0xff]  ;;  %v418_v39 = vld [vmem:[%s1532_s30 + $0x3a8] sm:$0xff]  ;;  %v938_v10 = vsub.s32 1, %v1577_v6 }
  0x3e   : > { %1355 = vmatpush3.bf16.msra.mxu0 %v1354_v16  ;;  %v388_v16 = vld [vmem:[%s1532_s30 + $0x2b8] sm:$0xff]  ;;  %v419_v47 = vld [vmem:[%s1532_s30 + $0x3b0] sm:$0xff] }
  0x3f   : > { %1356 = vmatprep.subr.bf16.mxu0 %v1474_v60  ;;  %1370 = vmatpush3.bf16.msra.mxu1 %v1369_v19  ;;  %v1389_v19 = vpack.c.bf16 %v388_v16, %v387_v15  ;;  %v420_v48 = vld [vmem:[%s1532_s30 + $0x3b8] sm:$0xff]  ;;  %v948_v15 = vsub.s32 2, %v1577_v6 }
  0x40   : > { %1372 = vmatprep.subr.bf16.mxu1 %v1371_v22  ;;  %v431_v22 = vld [vmem:[%s1532_s30 + $0x410] sm:$0xff]  ;;  %v444_v51 = vld [vmem:[%s1532_s30 + $0x478] sm:$0xff]  ;;  %v1421_v52 = vpack.c.bf16 %v420_v48, %v419_v47 }
  0x41   : > { %v1411_v28 = vpack.c.bf16 %v432_v23, %v431_v22 }
  0x42   : > { %1358 = vmatpush3.bf16.msra.mxu0 %v1357_v29  ;;  %v415_v29 = vld [vmem:[%s1532_s30 + $0x390] sm:$0xff] }
  0x43   : > { %1392 = vmatprep.subr.bf16.mxu0 %v1391_v30  ;;  %1374 = vmatpush3.bf16.msra.mxu1 %v1373_v31  ;;  %v416_v30 = vld [vmem:[%s1532_s30 + $0x398] sm:$0xff]  ;;  %v1424_v31 = vpack.c.bf16 %v438_v26, %v437_v24 }
  0x44   : > { %1376 = vmatprep.subr.bf16.mxu1 %v1375_v35  ;;  %v440_v35 = vld [vmem:[%s1532_s30 + $0x458] sm:$0xff]  ;;  %v1413_v36 = vpack.c.bf16 %v416_v30, %v415_v29 }
  0x45   : > { %1262 = vmatmul.mubr.msk.f32.vlgmr.msra.gmra.mrb[2].mxu0 %vm477_vm1, %v1082_v41  ;;  %v1427_v40 = vpack.c.bf16 %v440_v35, %v439_v34  ;;  %v435_v41 = vld [vmem:[%s1532_s30 + $0x430] sm:$0xff] }
  0x46   : > { %1394 = vmatpush3.bf16.msra.mxu0 %v1393_v42  ;;  %838 = vmatprep.mubr.f32.mxu0 %v699_v49  ;;  %v436_v42 = vld [vmem:[%s1532_s30 + $0x438] sm:$0xff] }
  0x47   : > { %1396 = vmatprep.subr.bf16.mxu0 %v1395_v44  ;;  %1378 = vmatpush3.bf16.msra.mxu1 %v1377_v45  ;;  %v441_v44 = vld [vmem:[%s1532_s30 + $0x460] sm:$0xff]  ;;  %v442_v45 = vld [vmem:[%s1532_s30 + $0x468] sm:$0xff]  ;;  %v1419_v46 = vpack.c.bf16 %v436_v42, %v435_v41 }
  0x48   : > { %1380 = vmatprep.subr.bf16.mxu1 %v1379_v50  ;;  %v1430_v49 = vpack.c.bf16 %v442_v45, %v441_v44  ;;  %v443_v50 = vld [vmem:[%s1532_s30 + $0x470] sm:$0xff] }
  0x49   : > { %v1433_v53 = vpack.c.bf16 %v444_v51, %v443_v50 }
  0x4a   : > { %1398 = vmatpush3.bf16.msra.mxu0 %v1397_v56 }
  0x4b   : > { %1400 = vmatprep.subr.bf16.mxu0 %v1399_v57  ;;  %1382 = vmatpush3.bf16.msra.mxu1 %v1381_v58 }
  0x4c   : > { %1384 = vmatprep.subr.bf16.mxu1 %v1383_v63 }
  0x4e   : > { %1402 = vmatpush3.bf16.msra.mxu0 %v1401_v5 }
  0x4f   : > { %1404 = vmatprep.subr.bf16.mxu0 %v1403_v7  ;;  %1386 = vmatpush3.bf16.msra.mxu1 %v1385_v8 }
  0x50   : > { %1388 = vmatprep.subr.bf16.mxu1 %v1387_v12 }
  0x52   : > { %1406 = vmatpush3.bf16.msra.mxu0 %v1405_v17 }
  0x53   : > { %1408 = vmatprep.subr.bf16.mxu0 %v1407_v18  ;;  %1390 = vmatpush3.bf16.msra.mxu1 %v1389_v19  ;;  %v958_v19 = vsub.s32 3, %v1577_v6 }
  0x54   : > { %1423 = vmatprep.subr.bf16.mxu1 %v1474_v60 }
  0x56   : > { %1410 = vmatpush3.bf16.msra.mxu0 %v1409_v27  ;;  %769 = vmatmul.mubr.f32.vlgmr.msra.gmra.mrb[2].mxu1 %v1646_v25  ;;  %v1417_v25 = vpack.c.bf16 %v418_v39, %v417_v38 }
  0x57   : > { %1412 = vmatprep.subr.bf16.mxu0 %v1411_v28  ;;  %1425 = vmatpush3.bf16.msra.mxu1 %v1424_v31 }
  0x58   : > { %1426 = vmatprep.subr.bf16.mxu1 %v1474_v60  ;;  %1280 = vmatprep.mubr.msk.f32.mxu1 %vm1475_vm0, %v1476_v13  ;;  %v694_v13 = vld [vmem:[%s1636_s14 + $0x10] sm:$0xf] }
  0x5a   : > { %1414 = vmatpush3.bf16.msra.mxu0 %v1413_v36 }
  0x5b   : > { %1416 = vmatprep.subr.bf16.mxu0 %v1415_v37  ;;  %1428 = vmatpush3.bf16.msra.mxu1 %v1427_v40 }
  0x5c   : > { %1429 = vmatprep.subr.bf16.mxu1 %v1474_v60 }
  0x5e   : > { %1418 = vmatpush3.bf16.msra.mxu0 %v1417_v25 }
  0x5f   : > { %1420 = vmatprep.subr.bf16.mxu0 %v1419_v46  ;;  %1431 = vmatpush3.bf16.msra.mxu1 %v1430_v49 }
  0x60   : > { %1432 = vmatprep.subr.bf16.mxu1 %v1474_v60 }
  0x62   : > { %1422 = vmatpush3.bf16.msra.mxu0 %v1421_v52 }
  0x63   : > { %1434 = vmatpush3.bf16.msra.mxu1 %v1433_v53 }
  0x65   : > { %839 = vmatmul.mubr.f32.vlgmr.msra.gmra.mrb[4].mxu0 %v1663_v43 }
  0x66   : > { %1281 = vmatmul.mubr.msk.f32.vlgmr.msra.gmra.mrb[4].mxu1 %vm477_vm1, %v694_v13 }
  0x86   : > { %v919_v3 = vpop.permute.xlu0 %918  ;;  %v934_v12 = vpop.permute.xlu1 %933 }
  0x8a   : > { %v929_v16 = vpop.permute.xlu0 %928 }
  0x8b   : > { %v944_v22 = vpop.permute.xlu1 %943 }
  0x8f   : > { %v954_v27 = vpop.permute.xlu0 %953 }
 0x108   : > { %v1119_v54 = vpop.f32.mrb[0].mxu0 }
 0x109   : > { %v1154_v55 = vpop.f32.mrb[0].mxu1  ;;  %v1120_v56 = vpop.f32.mrb[1].mxu0 }
 0x10a   : > { %v1121_v57 = vadd.f32 %v1120_v56, %v1119_v54  ;;  %v1155_v58 = vpop.f32.mrb[1].mxu1 }
 0x10b   : > { %v1156_v59 = vadd.f32 %v1155_v58, %v1154_v55 }
 0x10d   : > { %v617_v61 = vadd.f32 %v1156_v59, %v1121_v57 }
 0x118   : > { %v686_v60 = vpop.f32.mrb[2].mxu0 }
 0x119   : > { %v687_v62 = vadd.f32 %v686_v60, %v617_v61  ;;  %v1263_v63 = vpop.f32.mrb[3].mxu0 }
 0x11b   : > { %691 = vst.msk [vmem:[%s296_s18] sm:$0x3] %vm690_vm2, %v687_v62 }
 0x129   : > { %v1198_v43 = vpop.f32.mrb[2].mxu1 }
 0x12a   : > { %v1199_v0 = vpop.f32.mrb[3].mxu1 }
 0x12b   : > { %v1200_v1 = vadd.f32 %v1199_v0, %v1198_v43 }
 0x138   : > { %v1233_v2 = vpop.f32.mrb[4].mxu0 }
 0x139   : > { %v1234_v4 = vpop.f32.mrb[5].mxu0  ;;  %v910_v5 = vpop.f32.mrb[4].mxu1 }
 0x13a   : > { %v1235_v7 = vadd.f32 %v1234_v4, %v1233_v2  ;;  %v1282_v8 = vpop.f32.mrb[5].mxu1 }
 0x13c   : > { %v841_v9 = vadd.f32 %v1235_v7, %v1200_v1 }
 0x13e   : > { %v911_v14 = vadd.f32 %v910_v5, %v841_v9 }
 0x140   : > { %v939_v17 = vrot.slane %v911_v14, %v938_v10  ;;  %v924_v18 = vrot.slane %v911_v14, %v923_v11  ;;  %v949_v21 = vrot.slane %v911_v14, %v948_v15  ;;  %v959_v26 = vrot.slane %v911_v14, %v958_v19 }
 0x142   : > { %v925_v20 = vmul.f32 %v924_v18, %v919_v3  ;;  %v940_v23 = vmul.f32 %v939_v17, %v934_v12  ;;  %v950_v29 = vmul.f32 %v949_v21, %v944_v22  ;;  %v960_v31 = vmul.f32 %v959_v26, %v954_v27 }
 0x144   : > { %v931_v24 = vadd.f32 %v929_v16, %v925_v20 }
 0x146   : > { %v941_v28 = vadd.f32 %v940_v23, %v931_v24 }
 0x148   : > { %v951_v30 = vadd.f32 %v950_v29, %v941_v28 }
 0x14a   : > { %v961_v32 = vadd.f32 %v960_v31, %v951_v30 }
 0x14c   : > { %963 = vst.msk [vmem:[%s300_s24] sm:$0xf] %vm962_vm3, %v961_v32 }
 0x14d PF: > { %s17_s21 = sadd.s32 1, %s1467_s21  }
 0x14e   : > { %p14_p4 = scmp.ge.s32.totalorder %s17_s21, 4  }
 0x150   :  { %16 = sbr.rel (!%p14_p4) target bundleno = 1 (0x1), region = 88 }

</bundles_post_ra>
